<compile_context>
chip_gen: v7x
topology: tpu7x:2x2x1
jax: 0.10.0
libtpu: 0.0.40
codegen_flags: <defaults>
</compile_context>

<pallas_src>
import functools

import jax
import jax.numpy as jnp
from jax import lax
from jax.experimental import pallas as pl
from jax.experimental.pallas import tpu as pltpu

_LANE = 128
_SUBLANE = 8
_NEG = -1e30


def _round_up(x, m):
    return ((x + m - 1) // m) * m


def _vmem_budget(estimate_bytes):
    # 2x headroom for double-buffering / fragmentation; clamp into a range that
    # is safe on v5e (16 MiB default) and under v7x's 64 MiB physical VMEM.
    return int(min(max(2 * estimate_bytes, 16 << 20), 48 << 20))


# ---------------------------------------------------------------------------
# Pass 1: scores + source features + running per-head max + neighborhood sums
# ---------------------------------------------------------------------------
def _scores_neigh_kernel(src_idx_ref, trg_idx_ref, trg_row_ref, nodes_ref,
                         w_ref, rep_ref, sel_ref,
                         scores_ref, srcf_ref, neigh_ref, m_ref,
                         *, num_edges, num_heads):
    t = pl.program_id(0)
    e_tile = src_idx_ref.shape[0]
    n_pad, _ = nodes_ref.shape
    s_pad = sel_ref.shape[1]
    mm_dtype = nodes_ref.dtype          # f32, or bf16 when use_bf16_matmul=True

    @pl.when(t == 0)
    def _init():
        neigh_ref[...] = jnp.zeros_like(neigh_ref)
        m_ref[...] = jnp.full_like(m_ref, _NEG)

    # ---- lift(): fused one-hot gather of src & trg node features ----------
    # One-hot gather is the right regime while N_pad is ~128-256 and the node
    # slab fits VMEM.
    # TODO(synk): for large N switch to a scalar-prefetch / manual-DMA row
    # gather of the HBM-resident node table instead of the one-hot matmul.
    idx2 = jnp.concatenate([src_idx_ref[...], trg_idx_ref[...]], axis=0)   # (2*e_tile, 1)
    oh2 = (lax.broadcasted_iota(jnp.int32, (2 * e_tile, n_pad), 1)
           == idx2).astype(jnp.float32).astype(mm_dtype)
    feats = jnp.dot(oh2, nodes_ref[...], preferred_element_type=jnp.float32)
    src_f = feats[:e_tile]                                                  # (e_tile, F_pad)
    trg_f = feats[e_tile:]

    # ---- bilinear per-head scores, heads segmented by the real F ----------
    # proj[e, h*F + g] = sum_f src[e, f] * W[h, f, g]
    proj = jnp.dot(src_f.astype(mm_dtype), w_ref[...],
                   preferred_element_type=jnp.float32)                      # (e_tile, G_pad)
    # trg replicated across heads via a static 0/1 matrix (no jnp.tile temp)
    trg_rep = jnp.dot(trg_f.astype(mm_dtype), rep_ref[...],
                      preferred_element_type=jnp.float32)
    prod = proj * trg_rep
    scores = jnp.dot(prod.astype(mm_dtype), sel_ref[...],
                     preferred_element_type=jnp.float32)                    # (e_tile, S_pad)

    # LeakyReLU(0.2)
    scores = jnp.where(scores >= 0.0, scores, 0.2 * scores)

    # mask padded heads / padded edges
    lane_ok = lax.broadcasted_iota(jnp.int32, (e_tile, s_pad), 1) < num_heads
    edge_ok = (lax.broadcasted_iota(jnp.int32, (e_tile, s_pad), 0)
               + t * e_tile) < num_edges
    valid = lane_ok & edge_ok
    scores = jnp.where(valid, scores, _NEG)

    scores_ref[...] = scores                  # lane-dense store
    srcf_ref[...] = src_f                     # lane-dense store

    # ---- flash-style running per-head max + neighborhood scatter-add ------
    m_old = m_ref[...]                                                      # (1, S_pad)
    m_new = jnp.maximum(m_old, jnp.max(scores, axis=0, keepdims=True))
    exp_s = jnp.where(valid, jnp.exp(scores - m_new), 0.0)

    # scatter-add per target node: one-hot built directly in (N_pad, e_tile)
    # layout so the contraction is a plain (non-transposed) MXU matmul.
    trg_oh_t = (lax.broadcasted_iota(jnp.int32, (n_pad, e_tile), 0)
                == trg_row_ref[...]).astype(jnp.float32).astype(mm_dtype)
    update = jnp.dot(trg_oh_t, exp_s.astype(mm_dtype),
                     preferred_element_type=jnp.float32)                    # (N_pad, S_pad)

    neigh_ref[...] = neigh_ref[...] * jnp.exp(m_old - m_new) + update
    m_ref[...] = m_new


# ---------------------------------------------------------------------------
# Pass 2: per-edge denominator gather + attention write (parallel over tiles)
# ---------------------------------------------------------------------------
def _attn_kernel(trg_idx_ref, scores_ref, neigh_ref, m_ref, attn_ref):
    e_tile = trg_idx_ref.shape[0]
    n_pad = neigh_ref.shape[0]

    exp_s = jnp.exp(scores_ref[...] - m_ref[...])     # padded rows -> 0; padded lanes sliced off

    # per-edge denominator: gather rows of the small resident (N_pad, S_pad)
    # neighborhood table with a tile-local one-hot matmul.
    # TODO(synk): for large N replace with an index-driven row gather
    # (scalar-prefetch indices + jnp.take / DMA) to drop this O(E*N*S) term.
    trg_oh = (lax.broadcasted_iota(jnp.int32, (e_tile, n_pad), 1)
              == trg_idx_ref[...]).astype(jnp.float32)
    denom = jnp.dot(trg_oh, neigh_ref[...], preferred_element_type=jnp.float32)

    # approx=True would put the reciprocal fully on the EUP, but approx=False
    # keeps the 1e-4 reference tolerance comfortably.
    attn_ref[...] = exp_s * pl.reciprocal(denom + 1e-16, approx=False)


# ---------------------------------------------------------------------------
# Wrapper
# ---------------------------------------------------------------------------
def attention_inner_product(nodes_features, edge_index, metric_weights,
                            *, edge_tile=512, use_bf16_matmul=False):
    """nodes_features: (N, 1, F) f32; edge_index: (2, E) int (row 0 = target,
    row 1 = source node ids); metric_weights: (1, NH, F, F) f32.
    Returns (attentions_per_edge (E, NH, 1), nodes_features_source (E, 1, F))."""
    N, _, F = nodes_features.shape
    E = edge_index.shape[1]
    NH = metric_weights.shape[1]

    mm_dtype = jnp.bfloat16 if use_bf16_matmul else jnp.float32

    F_pad = _round_up(F, _LANE)
    N_pad = _round_up(N, _LANE)
    S_pad = _round_up(NH, _LANE)
    G = NH * F
    G_pad = _round_up(G, _LANE)

    # Edge tiles are multiples of 128 so every block (including the row-layout
    # index block) is lane/sublane friendly and the scatter matmul has a
    # 128-multiple contraction dim.
    E_tile = min(_round_up(E, _LANE), _round_up(edge_tile, _LANE))
    E_pad = _round_up(E, E_tile)
    num_tiles = E_pad // E_tile

    # Node features -> lane-dense (N_pad, F_pad) slab (VMEM resident).
    nodes2d = jnp.zeros((N_pad, F_pad), jnp.float32).at[:N, :F].set(
        nodes_features.reshape(N, F).astype(jnp.float32)).astype(mm_dtype)

    # Metric weights -> (F_pad, G_pad), heads segmented by the REAL F:
    # w_all[f, h*F + g] = W[h, f, g].
    w = metric_weights.reshape(NH, F, F).astype(jnp.float32)
    w_all = jnp.zeros((F_pad, G_pad), jnp.float32).at[:F, :G].set(
        jnp.transpose(w, (1, 0, 2)).reshape(F, G)).astype(mm_dtype)

    # Static 0/1 replication matrix: rep[g, h*F + g] = 1 (replaces jnp.tile).
    col = jnp.arange(G_pad, dtype=jnp.int32)[None, :]
    row = jnp.arange(F_pad, dtype=jnp.int32)[:, None]
    rep = ((col < G) & (row < F) & (col % F == row)).astype(mm_dtype)

    # Per-head segment-sum selector: sel[h*F + g, h] = 1.
    srow = jnp.arange(G_pad, dtype=jnp.int32)[:, None]
    head = jnp.arange(S_pad, dtype=jnp.int32)[None, :]
    sel = ((srow < G) & (srow // F == head)).astype(mm_dtype)

    # Edge indices; padded edges point out of range so their one-hot rows are
    # all-zero (no gather result, no scatter contribution).
    trg_idx = edge_index[0].astype(jnp.int32)
    src_idx = edge_index[1].astype(jnp.int32)
    if E_pad != E:
        pad = jnp.full((E_pad - E,), N_pad, dtype=jnp.int32)
        trg_idx = jnp.concatenate([trg_idx, pad])
        src_idx = jnp.concatenate([src_idx, pad])
    src_col = src_idx.reshape(E_pad, 1)
    trg_col = trg_idx.reshape(E_pad, 1)
    trg_row = trg_idx.reshape(1, E_pad)

    esize = jnp.dtype(mm_dtype).itemsize

    # ---- rough VMEM footprints -> vmem_limit_bytes --------------------------
    resident1 = esize * (N_pad * F_pad + 2 * F_pad * G_pad + G_pad * S_pad)
    tiles1 = 2 * (4 * 3 * E_tile + 4 * E_tile * (S_pad + F_pad))
    acc1 = 4 * (N_pad * S_pad + S_pad)
    interm1 = (esize * (3 * E_tile * N_pad + E_tile * G_pad + E_tile * S_pad)
               + 4 * (2 * E_tile * F_pad + 3 * E_tile * G_pad + 3 * E_tile * S_pad))
    vmem1 = _vmem_budget(resident1 + tiles1 + acc1 + interm1)

    resident2 = 4 * (N_pad * S_pad + S_pad)
    tiles2 = 2 * (4 * E_tile + 2 * 4 * E_tile * S_pad)
    interm2 = 4 * (E_tile * N_pad + 2 * E_tile * S_pad)
    vmem2 = _vmem_budget(resident2 + tiles2 + interm2)

    cost1 = pl.CostEstimate(
        flops=int(2 * E_pad * (2 * N_pad * F_pad + 2 * F_pad * G_pad
                               + G_pad * S_pad + N_pad * S_pad)),
        transcendentals=int(2 * E_pad * S_pad),
        bytes_accessed=int(resident1 + 4 * E_pad * (S_pad + F_pad) + 12 * E_pad
                           + 4 * (N_pad * S_pad + S_pad)))
    cost2 = pl.CostEstimate(
        flops=int(2 * E_pad * N_pad * S_pad),
        transcendentals=int(E_pad * S_pad),
        bytes_accessed=int(4 * (2 * E_pad * S_pad + N_pad * S_pad + S_pad) + 4 * E_pad))

    # ---- pass 1: scores / src features / running max / neighborhood sums ----
    scores_pad, srcf_pad, neigh, m_pad = pl.pallas_call(
        functools.partial(_scores_neigh_kernel, num_edges=E, num_heads=NH),
        grid=(num_tiles,),
        in_specs=[
            pl.BlockSpec((E_tile, 1), lambda i: (i, 0)),       # src ids (column layout)
            pl.BlockSpec((E_tile, 1), lambda i: (i, 0)),       # trg ids (column layout)
            pl.BlockSpec((1, E_tile), lambda i: (0, i)),       # trg ids (row layout)
            pl.BlockSpec((N_pad, F_pad), lambda i: (0, 0)),    # node slab (resident)
            pl.BlockSpec((F_pad, G_pad), lambda i: (0, 0)),    # w_all (resident)
            pl.BlockSpec((F_pad, G_pad), lambda i: (0, 0)),    # rep (resident)
            pl.BlockSpec((G_pad, S_pad), lambda i: (0, 0)),    # sel (resident)
        ],
        out_specs=(
            pl.BlockSpec((E_tile, S_pad), lambda i: (i, 0)),   # scores
            pl.BlockSpec((E_tile, F_pad), lambda i: (i, 0)),   # src features
            pl.BlockSpec((N_pad, S_pad), lambda i: (0, 0)),    # neigh accumulator
            pl.BlockSpec((1, S_pad), lambda i: (0, 0)),        # running per-head max
        ),
        out_shape=(
            jax.ShapeDtypeStruct((E_pad, S_pad), jnp.float32),
            jax.ShapeDtypeStruct((E_pad, F_pad), jnp.float32),
            jax.ShapeDtypeStruct((N_pad, S_pad), jnp.float32),
            jax.ShapeDtypeStruct((1, S_pad), jnp.float32),
        ),
        compiler_params=pltpu.CompilerParams(
            dimension_semantics=("arbitrary",),      # accumulators -> sequential
            vmem_limit_bytes=vmem1),
        cost_estimate=cost1,
    )(src_col, trg_col, trg_row, nodes2d, w_all, rep, sel)

    # ---- pass 2: denominator gather + attention write ("parallel" tiles) ----
    attn_pad = pl.pallas_call(
        _attn_kernel,
        grid=(num_tiles,),
        in_specs=[
            pl.BlockSpec((E_tile, 1), lambda i: (i, 0)),       # trg ids
            pl.BlockSpec((E_tile, S_pad), lambda i: (i, 0)),   # scores
            pl.BlockSpec((N_pad, S_pad), lambda i: (0, 0)),    # neigh (resident)
            pl.BlockSpec((1, S_pad), lambda i: (0, 0)),        # running max (resident)
        ],
        out_specs=pl.BlockSpec((E_tile, S_pad), lambda i: (i, 0)),
        out_shape=jax.ShapeDtypeStruct((E_pad, S_pad), jnp.float32),
        compiler_params=pltpu.CompilerParams(
            dimension_semantics=("parallel",),       # independent tiles -> both TCs on v7x
            vmem_limit_bytes=vmem2),
        cost_estimate=cost2,
    )(trg_col, scores_pad, neigh, m_pad)

    # TODO(synk): for very large E, pack attn lanes (NH << 128) / emit bf16 to
    # cut HBM write amplification of the padded output slabs.
    attn = attn_pad[:E, :NH].reshape(E, NH, 1)
    src_f = srcf_pad[:E, :F].reshape(E, 1, F)
    return attn, src_f


def reference(nodes_features, edge_index, metric_weights):
    """Pure-JAX transcription of the PyTorch forward, for verification."""
    NH = metric_weights.shape[1]
    F = metric_weights.shape[2]
    N = nodes_features.shape[0]
    src = nodes_features[edge_index[1]]                   # (E, 1, F)
    trg = nodes_features[edge_index[0]]                   # (E, 1, F)
    trg_v = trg.reshape(-1, 1, F, 1)
    trg_p = jnp.matmul(metric_weights, trg_v).reshape(-1, NH, F)
    scores = (src * trg_p).sum(-1)                        # (E, NH)
    scores = jnp.where(scores >= 0.0, scores, 0.2 * scores)
    scores = scores - scores.max()
    exp_s = jnp.exp(scores)
    sums = jnp.zeros((N, NH), jnp.float32).at[edge_index[0]].add(exp_s)
    denom = sums[edge_index[0]]
    attn = exp_s / (denom + 1e-16)
    return attn[..., None], src


if __name__ == "__main__":
    N, F, NH, E = 16, 32, 4, 48

    key = jax.random.PRNGKey(0)
    k1, k2, k3, k4 = jax.random.split(key, 4)

    nodes_features = jax.random.normal(k1, (N, 1, F), dtype=jnp.float32)
    src = jax.random.randint(k2, (E,), 0, N, dtype=jnp.int32)
    trg = jax.random.randint(k3, (E,), 0, N, dtype=jnp.int32)
    edge_index = jnp.stack([trg, src], axis=0)            # row 0 = trg, row 1 = src

    # xavier_uniform_ on (1, NH, F, F): fan_in = NH*F*F, fan_out = 1*F*F
    fan_in, fan_out = NH * F * F, F * F
    bound = (6.0 / (fan_in + fan_out)) ** 0.5
    metric_weights = jax.random.uniform(
        k4, (1, NH, F, F), minval=-bound, maxval=bound, dtype=jnp.float32)

    attn, src_f = attention_inner_product(nodes_features, edge_index, metric_weights)
    jax.block_until_ready((attn, src_f))

    attn_ref, src_ref = reference(nodes_features, edge_index, metric_weights)
    assert attn.shape == (E, NH, 1) and src_f.shape == (E, 1, F)
    assert jnp.allclose(attn, attn_ref, atol=1e-4, rtol=1e-4)
    assert jnp.allclose(src_f, src_ref, atol=1e-4, rtol=1e-4)

    # bf16-MXU path (v6e/v7x fast path): smoke-test compile + run; precision is
    # intentionally relaxed, so only check it produces finite outputs.
    attn_b, src_b = attention_inner_product(
        nodes_features, edge_index, metric_weights, use_bf16_matmul=True)
    jax.block_until_ready((attn_b, src_b))
    assert bool(jnp.all(jnp.isfinite(attn_b))) and bool(jnp.all(jnp.isfinite(src_b)))

    print("KERNEL_OK")
</pallas_src>

<mosaic_0001>
module attributes {stable_mosaic.version = 11 : i64} {
  func.func @_scores_neigh_kernel(%arg0: i32, %arg1: memref<128x1xi32, #tpu.memory_space<vmem>>, %arg2: memref<128x1xi32, #tpu.memory_space<vmem>>, %arg3: memref<1x128xi32, #tpu.memory_space<vmem>>, %arg4: memref<128x128xf32, #tpu.memory_space<vmem>>, %arg5: memref<128x128xf32, #tpu.memory_space<vmem>>, %arg6: memref<128x128xf32, #tpu.memory_space<vmem>>, %arg7: memref<128x128xf32, #tpu.memory_space<vmem>>, %arg8: memref<128x128xf32, #tpu.memory_space<vmem>>, %arg9: memref<128x128xf32, #tpu.memory_space<vmem>>, %arg10: memref<128x128xf32, #tpu.memory_space<vmem>>, %arg11: memref<1x128xf32, #tpu.memory_space<vmem>>) attributes {dimension_semantics = [#tpu.dimension_semantics<arbitrary>], iteration_bounds = array<i64: 1>, scalar_prefetch = 0 : i64, scratch_operands = 0 : i64, tpu.core_type = #tpu.core_type<tc>, window_params = [{transform_indices = @transform_0, window_bounds = array<i64: 128, 1>}, {transform_indices = @transform_1, window_bounds = array<i64: 128, 1>}, {transform_indices = @transform_2, window_bounds = array<i64: 1, 128>}, {pipeline_mode = #tpu.pipeline_mode<synchronous>, transform_indices = @transform_3, window_bounds = array<i64: 128, 128>}, {pipeline_mode = #tpu.pipeline_mode<synchronous>, transform_indices = @transform_4, window_bounds = array<i64: 128, 128>}, {pipeline_mode = #tpu.pipeline_mode<synchronous>, transform_indices = @transform_5, window_bounds = array<i64: 128, 128>}, {pipeline_mode = #tpu.pipeline_mode<synchronous>, transform_indices = @transform_6, window_bounds = array<i64: 128, 128>}, {transform_indices = @transform_7, window_bounds = array<i64: 128, 128>}, {transform_indices = @transform_8, window_bounds = array<i64: 128, 128>}, {pipeline_mode = #tpu.pipeline_mode<synchronous>, transform_indices = @transform_9, window_bounds = array<i64: 128, 128>}, {pipeline_mode = #tpu.pipeline_mode<synchronous>, transform_indices = @transform_10, window_bounds = array<i64: 1, 128>}]} {
    %c0_i32 = arith.constant 0 : i32
    %0 = arith.cmpi eq, %arg0, %c0_i32 : i32
    %1 = arith.extui %0 : i1 to i32
    %c0_i32_0 = arith.constant 0 : i32
    %2 = arith.cmpi ne, %1, %c0_i32_0 : i32
    scf.if %2 {
      %cst_35 = arith.constant 0.000000e+00 : f32
      %65 = vector.broadcast %cst_35 : f32 to vector<128x128xf32>
      %c0_36 = arith.constant 0 : index
      %c0_37 = arith.constant 0 : index
      %66 = vector.load %arg10[%c0_36, %c0_37] : memref<128x128xf32, #tpu.memory_space<vmem>>, vector<128x128xf32>
      tpu.vector_store %arg10[%c0_36, %c0_37], %65 {strides = array<i32>} : memref<128x128xf32, #tpu.memory_space<vmem>>, vector<128x128xf32>,
      %cst_38 = arith.constant -1.000000e+30 : f32
      %67 = vector.broadcast %cst_38 : f32 to vector<1x128xf32>
      %c0_39 = arith.constant 0 : index
      %c0_40 = arith.constant 0 : index
      %68 = vector.load %arg11[%c0_39, %c0_40] : memref<1x128xf32, #tpu.memory_space<vmem>>, vector<1x128xf32>
      tpu.vector_store %arg11[%c0_39, %c0_40], %67 {strides = array<i32>} : memref<1x128xf32, #tpu.memory_space<vmem>>, vector<1x128xf32>,
    } else {
    }
    %c0 = arith.constant 0 : index
    %c0_1 = arith.constant 0 : index
    %3 = vector.load %arg1[%c0, %c0_1] : memref<128x1xi32, #tpu.memory_space<vmem>>, vector<128x1xi32>
    %c0_2 = arith.constant 0 : index
    %c0_3 = arith.constant 0 : index
    %4 = vector.load %arg2[%c0_2, %c0_3] : memref<128x1xi32, #tpu.memory_space<vmem>>, vector<128x1xi32>
    %5 = tpu.concatenate %3, %4 in 0 : vector<128x1xi32>, vector<128x1xi32> -> vector<256x1xi32>
    %6 = tpu.iota {dimensions = array<i32: 1>} : vector<256x128xi32>
    %7 = vector.broadcast %5 : vector<256x1xi32> to vector<256x128xi32>
    %8 = arith.cmpi eq, %6, %7 : vector<256x128xi32>
    %9 = arith.extui %8 : vector<256x128xi1> to vector<256x128xi32>
    %10 = arith.sitofp %9 : vector<256x128xi32> to vector<256x128xf32>
    %c0_4 = arith.constant 0 : index
    %c0_5 = arith.constant 0 : index
    %11 = vector.load %arg4[%c0_4, %c0_5] : memref<128x128xf32, #tpu.memory_space<vmem>>, vector<128x128xf32>
    %cst = arith.constant dense<0.000000e+00> : vector<256x128xf32>
    %12 = tpu.matmul %10, %11, %cst {dimension_numbers = #tpu.dot_dimension_numbers<[1], [0], [0], [1], [0, 0, 1, 1], [], []>} : vector<256x128xf32>, vector<128x128xf32>, vector<256x128xf32> -> vector<256x128xf32>
    %13 = vector.extract_strided_slice %12 {offsets = [0, 0], sizes = [128, 128], strides = [1, 1]} : vector<256x128xf32> to vector<128x128xf32>
    %14 = vector.extract_strided_slice %12 {offsets = [128, 0], sizes = [128, 128], strides = [1, 1]} : vector<256x128xf32> to vector<128x128xf32>
    %c0_6 = arith.constant 0 : index
    %c0_7 = arith.constant 0 : index
    %15 = vector.load %arg5[%c0_6, %c0_7] : memref<128x128xf32, #tpu.memory_space<vmem>>, vector<128x128xf32>
    %cst_8 = arith.constant dense<0.000000e+00> : vector<128x128xf32>
    %16 = tpu.matmul %13, %15, %cst_8 {dimension_numbers = #tpu.dot_dimension_numbers<[1], [0], [0], [1], [0, 0, 1, 1], [], []>} : vector<128x128xf32>, vector<128x128xf32>, vector<128x128xf32> -> vector<128x128xf32>
    %c0_9 = arith.constant 0 : index
    %c0_10 = arith.constant 0 : index
    %17 = vector.load %arg6[%c0_9, %c0_10] : memref<128x128xf32, #tpu.memory_space<vmem>>, vector<128x128xf32>
    %cst_11 = arith.constant dense<0.000000e+00> : vector<128x128xf32>
    %18 = tpu.matmul %14, %17, %cst_11 {dimension_numbers = #tpu.dot_dimension_numbers<[1], [0], [0], [1], [0, 0, 1, 1], [], []>} : vector<128x128xf32>, vector<128x128xf32>, vector<128x128xf32> -> vector<128x128xf32>
    %19 = arith.mulf %16, %18 : vector<128x128xf32>
    %c0_12 = arith.constant 0 : index
    %c0_13 = arith.constant 0 : index
    %20 = vector.load %arg7[%c0_12, %c0_13] : memref<128x128xf32, #tpu.memory_space<vmem>>, vector<128x128xf32>
    %cst_14 = arith.constant dense<0.000000e+00> : vector<128x128xf32>
    %21 = tpu.matmul %19, %20, %cst_14 {dimension_numbers = #tpu.dot_dimension_numbers<[1], [0], [0], [1], [0, 0, 1, 1], [], []>} : vector<128x128xf32>, vector<128x128xf32>, vector<128x128xf32> -> vector<128x128xf32>
    %cst_15 = arith.constant 0.000000e+00 : f32
    %22 = vector.broadcast %cst_15 : f32 to vector<128x128xf32>
    %23 = arith.cmpf oge, %21, %22 : vector<128x128xf32>
    %cst_16 = arith.constant 2.000000e-01 : f32
    %24 = vector.broadcast %cst_16 : f32 to vector<128x128xf32>
    %25 = arith.mulf %24, %21 : vector<128x128xf32>
    %26 = arith.select %23, %21, %25 : vector<128x128xi1>, vector<128x128xf32>
    %27 = tpu.iota {dimensions = array<i32: 1>} : vector<128x128xi32>
    %c4_i32 = arith.constant 4 : i32
    %28 = vector.broadcast %c4_i32 : i32 to vector<128x128xi32>
    %29 = arith.cmpi slt, %27, %28 : vector<128x128xi32>
    %30 = tpu.iota {dimensions = array<i32: 0>} : vector<128x128xi32>
    %c128_i32 = arith.constant 128 : i32
    %31 = arith.muli %arg0, %c128_i32 : i32
    %32 = vector.broadcast %31 : i32 to vector<128x128xi32>
    %33 = arith.addi %30, %32 : vector<128x128xi32>
    %c48_i32 = arith.constant 48 : i32
    %34 = vector.broadcast %c48_i32 : i32 to vector<128x128xi32>
    %35 = arith.cmpi slt, %33, %34 : vector<128x128xi32>
    %36 = arith.andi %29, %35 : vector<128x128xi1>
    %cst_17 = arith.constant -1.000000e+30 : f32
    %37 = vector.broadcast %cst_17 : f32 to vector<128x128xf32>
    %38 = arith.select %36, %26, %37 : vector<128x128xi1>, vector<128x128xf32>
    %c0_18 = arith.constant 0 : index
    %c0_19 = arith.constant 0 : index
    %39 = vector.load %arg8[%c0_18, %c0_19] : memref<128x128xf32, #tpu.memory_space<vmem>>, vector<128x128xf32>
    tpu.vector_store %arg8[%c0_18, %c0_19], %38 {strides = array<i32>} : memref<128x128xf32, #tpu.memory_space<vmem>>, vector<128x128xf32>,
    %c0_20 = arith.constant 0 : index
    %c0_21 = arith.constant 0 : index
    %40 = vector.load %arg9[%c0_20, %c0_21] : memref<128x128xf32, #tpu.memory_space<vmem>>, vector<128x128xf32>
    tpu.vector_store %arg9[%c0_20, %c0_21], %13 {strides = array<i32>} : memref<128x128xf32, #tpu.memory_space<vmem>>, vector<128x128xf32>,
    %c0_22 = arith.constant 0 : index
    %c0_23 = arith.constant 0 : index
    %41 = vector.load %arg11[%c0_22, %c0_23] : memref<1x128xf32, #tpu.memory_space<vmem>>, vector<1x128xf32>
    %cst_24 = arith.constant dense<0xFF800000> : vector<128xf32>
    %42 = vector.multi_reduction <maximumf>, %38, %cst_24 [0] : vector<128x128xf32> to vector<128xf32>
    %43 = vector.shape_cast %42 : vector<128xf32> to vector<1x128xf32>
    %44 = arith.maximumf %41, %43 : vector<1x128xf32>
    %45 = vector.broadcast %44 : vector<1x128xf32> to vector<128x128xf32>
    %46 = arith.subf %38, %45 : vector<128x128xf32>
    %47 = math.exp %46 : vector<128x128xf32>
    %cst_25 = arith.constant 0.000000e+00 : f32
    %48 = vector.broadcast %cst_25 : f32 to vector<128x128xf32>
    %49 = arith.select %36, %47, %48 : vector<128x128xi1>, vector<128x128xf32>
    %50 = tpu.iota {dimensions = array<i32: 0>} : vector<128x128xi32>
    %c0_26 = arith.constant 0 : index
    %c0_27 = arith.constant 0 : index
    %51 = vector.load %arg3[%c0_26, %c0_27] : memref<1x128xi32, #tpu.memory_space<vmem>>, vector<1x128xi32>
    %52 = vector.broadcast %51 : vector<1x128xi32> to vector<128x128xi32>
    %53 = arith.cmpi eq, %50, %52 : vector<128x128xi32>
    %54 = arith.extui %53 : vector<128x128xi1> to vector<128x128xi32>
    %55 = arith.sitofp %54 : vector<128x128xi32> to vector<128x128xf32>
    %cst_28 = arith.constant dense<0.000000e+00> : vector<128x128xf32>
    %56 = tpu.matmul %55, %49, %cst_28 {dimension_numbers = #tpu.dot_dimension_numbers<[1], [0], [0], [1], [0, 0, 1, 1], [], []>} : vector<128x128xf32>, vector<128x128xf32>, vector<128x128xf32> -> vector<128x128xf32>
    %c0_29 = arith.constant 0 : index
    %c0_30 = arith.constant 0 : index
    %57 = vector.load %arg10[%c0_29, %c0_30] : memref<128x128xf32, #tpu.memory_space<vmem>>, vector<128x128xf32>
    %58 = arith.subf %41, %44 : vector<1x128xf32>
    %59 = math.exp %58 : vector<1x128xf32>
    %60 = vector.broadcast %59 : vector<1x128xf32> to vector<128x128xf32>
    %61 = arith.mulf %57, %60 : vector<128x128xf32>
    %62 = arith.addf %61, %56 : vector<128x128xf32>
    %c0_31 = arith.constant 0 : index
    %c0_32 = arith.constant 0 : index
    %63 = vector.load %arg10[%c0_31, %c0_32] : memref<128x128xf32, #tpu.memory_space<vmem>>, vector<128x128xf32>
    tpu.vector_store %arg10[%c0_31, %c0_32], %62 {strides = array<i32>} : memref<128x128xf32, #tpu.memory_space<vmem>>, vector<128x128xf32>,
    %c0_33 = arith.constant 0 : index
    %c0_34 = arith.constant 0 : index
    %64 = vector.load %arg11[%c0_33, %c0_34] : memref<1x128xf32, #tpu.memory_space<vmem>>, vector<1x128xf32>
    tpu.vector_store %arg11[%c0_33, %c0_34], %44 {strides = array<i32>} : memref<1x128xf32, #tpu.memory_space<vmem>>, vector<1x128xf32>,
    return
  }
  func.func @transform_0(%arg0: i32) -> (i32, i32) {
    %c0_i32 = arith.constant 0 : i32
    %c0_i32_0 = arith.constant 0 : i32
    return %arg0, %c0_i32 : i32, i32
  }
  func.func @transform_1(%arg0: i32) -> (i32, i32) {
    %c0_i32 = arith.constant 0 : i32
    %c0_i32_0 = arith.constant 0 : i32
    return %arg0, %c0_i32 : i32, i32
  }
  func.func @transform_2(%arg0: i32) -> (i32, i32) {
    %c0_i32 = arith.constant 0 : i32
    %c0_i32_0 = arith.constant 0 : i32
    return %c0_i32, %arg0 : i32, i32
  }
  func.func @transform_3(%arg0: i32) -> (i32, i32) {
    %c0_i32 = arith.constant 0 : i32
    %c0_i32_0 = arith.constant 0 : i32
    %c0_i32_1 = arith.constant 0 : i32
    return %c0_i32, %c0_i32_0 : i32, i32
  }
  func.func @transform_4(%arg0: i32) -> (i32, i32) {
    %c0_i32 = arith.constant 0 : i32
    %c0_i32_0 = arith.constant 0 : i32
    %c0_i32_1 = arith.constant 0 : i32
    return %c0_i32, %c0_i32_0 : i32, i32
  }
  func.func @transform_5(%arg0: i32) -> (i32, i32) {
    %c0_i32 = arith.constant 0 : i32
    %c0_i32_0 = arith.constant 0 : i32
    %c0_i32_1 = arith.constant 0 : i32
    return %c0_i32, %c0_i32_0 : i32, i32
  }
  func.func @transform_6(%arg0: i32) -> (i32, i32) {
    %c0_i32 = arith.constant 0 : i32
    %c0_i32_0 = arith.constant 0 : i32
    %c0_i32_1 = arith.constant 0 : i32
    return %c0_i32, %c0_i32_0 : i32, i32
  }
  func.func @transform_7(%arg0: i32) -> (i32, i32) {
    %c0_i32 = arith.constant 0 : i32
    %c0_i32_0 = arith.constant 0 : i32
    return %arg0, %c0_i32 : i32, i32
  }
  func.func @transform_8(%arg0: i32) -> (i32, i32) {
    %c0_i32 = arith.constant 0 : i32
    %c0_i32_0 = arith.constant 0 : i32
    return %arg0, %c0_i32 : i32, i32
  }
  func.func @transform_9(%arg0: i32) -> (i32, i32) {
    %c0_i32 = arith.constant 0 : i32
    %c0_i32_0 = arith.constant 0 : i32
    %c0_i32_1 = arith.constant 0 : i32
    return %c0_i32, %c0_i32_0 : i32, i32
  }
  func.func @transform_10(%arg0: i32) -> (i32, i32) {
    %c0_i32 = arith.constant 0 : i32
    %c0_i32_0 = arith.constant 0 : i32
    %c0_i32_1 = arith.constant 0 : i32
    return %c0_i32, %c0_i32_0 : i32, i32
  }
}

</mosaic_0001>

<bundles_post_ra>
// kernel: tpu_custom_call.1
= control target key start
LH: loop header
LB: loop body
LE: loop exit
PB: predicated region body
PF: predicated region fallthrough
CT: control target
= control target key end

     0   :  { %16 = vsyncpa [#allocation3], 0  ;;  %s3109_s0 = inlined_call_operand.vmem [shape: s32[128,1], index: 0, kind: input, shape index: {}]   ;;  %s3110_s1 = inlined_call_operand.vmem [shape: s32[128,1], index: 1, kind: input, shape index: {}]   ;;  %s3111_s2 = inlined_call_operand.vmem [shape: s32[1,128], index: 2, kind: input, shape index: {}]   ;;  %s3112_s3 = inlined_call_operand.vmem [shape: f32[128,128], index: 3, kind: input, shape index: {}]   ;;  %s3113_s4 = inlined_call_operand.vmem [shape: f32[128,128], index: 4, kind: input, shape index: {}]   ;;  %s3114_s5 = inlined_call_operand.hbm [shape: f32[128,128], index: 5, kind: input, shape index: {}]   ;;  %s3115_s6 = inlined_call_operand.hbm [shape: f32[128,128], index: 6, kind: input, shape index: {}]   ;;  %s3116_s7 = inlined_call_operand.hbm [shape: f32[128,128], index: 7, kind: output, shape index: {0}]   ;;  %s3117_s8 = inlined_call_operand.hbm [shape: f32[128,128], index: 8, kind: output, shape index: {1}]   ;;  %s3118_s9 = inlined_call_operand.hbm [shape: f32[128,128], index: 9, kind: output, shape index: {2}]   ;;  %s3119_s10 = inlined_call_operand.hbm [shape: f32[1,128], index: 10, kind: output, shape index: {3}]  }
   0x1   :  { %17 = vsyncpa [#allocation6], 0 }
   0x2   :  { %18 = vsyncpa [#allocation4], 0 }
   0x3   :  { %19 = vsyncpa [#allocation9], 0 }
   0x4   :  { %20 = vsyncpa [#allocation12], 0  ;;  %s2509_s13 = smov [#allocation2]   ;;  %s2367_s17 = scalar_lea.hbm %s3114_s5, 2048 }
   0x5   :  { %s36_s14 = sshll.u32 %s2509_s13, 4  ;;  %p2368_p0 = scmp.ne.s32.totalorder %s3114_s5, %s2367_s17  ;;  %s37_s14 = int_to_ptr.vmem [resolvable:$true] %s36_s14 }
   0x6   :  { %p2371_p1 = scmp.lt.u32.totalorder %s2367_s17, %s3114_s5 }
   0x8   :  { %p2373_p2 = pnand %p2371_p1, %p2368_p0 }
   0xa   :  { %2376 = shalt.err (!%p2373_p2)
}
   0xb   :  { %s2377_s22 = scalar_lea.vmem %s37_s14, 2048  ;;  %p2382_p4 = scmp.lt.s32.totalorder %s37_s14, %s37_s14 }
   0xc   :  { %p2378_p3 = scmp.ne.s32.totalorder %s37_s14, %s2377_s22  ;;  %p2383_p5 = scmp.lt.s32.totalorder %s2377_s22, %s2377_s22 }
   0xe   :  { %p2384_p6 = por %p2383_p5, %p2382_p4 }
  0x10   :  { %p2385_p7 = pnand %p2384_p6, %p2378_p3 }
  0x12   :  { %2388 = shalt.err (!%p2385_p7)
}
  0x13   :  { %s2510_s23 = smov 128   ;;  %s2511_s24 = smov 8  }
  0x14   :  { %42 = dma.hbm_to_vmem [thread:$0]  %s3114_s5, 2048, %s37_s14, [#allocation3], %s2510_s23, %s2510_s23, %s2511_s24  }
  0x15   :  { %s2512_s27 = smov [#allocation5]   ;;  %s2389_s11 = scalar_lea.hbm %s3115_s6, 2048 }
  0x16   :  { %s48_s28 = sshll.u32 %s2512_s27, 4  ;;  %p2390_p8 = scmp.ne.s32.totalorder %s3115_s6, %s2389_s11  ;;  %s49_s28 = int_to_ptr.vmem [resolvable:$true] %s48_s28 }
  0x17   :  { %p2393_p9 = scmp.lt.u32.totalorder %s2389_s11, %s3115_s6 }
  0x19   :  { %p2395_p10 = pnand %p2393_p9, %p2390_p8 }
  0x1b   :  { %2398 = shalt.err (!%p2395_p10)
}
  0x1c   :  { %s2399_s17 = scalar_lea.vmem %s49_s28, 2048  ;;  %p2404_p12 = scmp.lt.s32.totalorder %s49_s28, %s49_s28 }
  0x1d   :  { %p2400_p11 = scmp.ne.s32.totalorder %s49_s28, %s2399_s17  ;;  %p2405_p13 = scmp.lt.s32.totalorder %s2399_s17, %s2399_s17 }
  0x1f   :  { %p2406_p0 = por %p2405_p13, %p2404_p12 }
  0x21   :  { %p2407_p1 = pnand %p2406_p0, %p2400_p11 }
  0x23   :  { %2410 = shalt.err (!%p2407_p1)
}
  0x24   :  { %54 = dma.hbm_to_vmem [thread:$0]  %s3115_s6, 2048, %s49_s28, [#allocation6], %s2510_s23, %s2510_s23, %s2511_s24  }
  0x25   :  { %2499 = dma.done.wait [#allocation3], 2048  }
  0x26   :  { %2500 = vsyncadd [#allocation3], 4294965248 }
  0x27   :  { %2501 = dma.done.wait [#allocation6], 2048  }
  0x28   :  { %2502 = vsyncadd [#allocation6], 4294965248  ;;  %v2513_v0 = vmov 0   ;;  %v84_v1 = vld [vmem:[%s3109_s0 + $0x10] sm:$0xff]  ;;  %v82_v2 = vld [vmem:[%s3109_s0] sm:$0xff]  ;;  %s2517_s20 = smov [#allocation7]  }
  0x29   :  { %2352 = vset.pattern.permute.xlu1 %v2513_v0  ;;  %2351 = vset.pattern.permute.xlu0 %v2513_v0  ;;  %v85_v3 = vld [vmem:[%s3109_s0 + $0x18] sm:$0xff]  ;;  %v83_v4 = vld [vmem:[%s3109_s0 + $0x8] sm:$0xff]  ;;  %v86_v6 = vld [vmem:[%s3109_s0 + $0x20] sm:$0xff]  ;;  %s1582_s21 = sshll.u32 %s2517_s20, 4  ;;  %s3044_s21 = int_to_ptr.vmem [resolvable:$true] %s1582_s21 }
  0x2a   :  { %123 = vperm.xlu1 %2352, %v84_v1   ;;  %117 = vperm.xlu0 %2351, %v82_v2   ;;  %v87_v5 = vld [vmem:[%s3109_s0 + $0x28] sm:$0xff]  ;;  %v89_v7 = vld [vmem:[%s3109_s0 + $0x38] sm:$0xff]  ;;  %v88_v8 = vld [vmem:[%s3109_s0 + $0x30] sm:$0xff] }
  0x2b   :  { %v308_v9 = vld [vmem:[%s3112_s3] sm:$0xff]  ;;  %v309_v10 = vld [vmem:[%s3112_s3 + $0x8] sm:$0xff]  ;;  %v310_v11 = vld [vmem:[%s3112_s3 + $0x10] sm:$0xff] }
  0x2c   :  { %v311_v12 = vld [vmem:[%s3112_s3 + $0x18] sm:$0xff]  ;;  %v2193_v13 = vpack.c.bf16 %v309_v10, %v308_v9  ;;  %v312_v15 = vld [vmem:[%s3112_s3 + $0x20] sm:$0xff]  ;;  %v313_v16 = vld [vmem:[%s3112_s3 + $0x28] sm:$0xff] }
  0x2d   :  { %v2197_v14 = vpack.c.bf16 %v311_v12, %v310_v11  ;;  %v91_v17 = vld [vmem:[%s3109_s0 + $0x48] sm:$0xff]  ;;  %v90_v18 = vld [vmem:[%s3109_s0 + $0x40] sm:$0xff]  ;;  %v2201_v19 = vpack.c.bf16 %v313_v16, %v312_v15  ;;  %v314_v20 = vld [vmem:[%s3112_s3 + $0x30] sm:$0xff] }
  0x2e   :  { %126 = vperm.xlu1 %2352, %v85_v3   ;;  %120 = vperm.xlu0 %2351, %v83_v4   ;;  %v315_v21 = vld [vmem:[%s3112_s3 + $0x38] sm:$0xff]  ;;  %v92_v23 = vld [vmem:[%s3109_s0 + $0x50] sm:$0xff]  ;;  %v316_v25 = vld [vmem:[%s3112_s3 + $0x40] sm:$0xff] }
  0x2f   :  { %2194 = vmatprep.subr.bf16.mxu0 %v2193_v13  ;;  %v93_v22 = vld [vmem:[%s3109_s0 + $0x58] sm:$0xff]  ;;  %v2205_v24 = vpack.c.bf16 %v315_v21, %v314_v20  ;;  %v317_v26 = vld [vmem:[%s3112_s3 + $0x48] sm:$0xff]  ;;  %v94_v28 = vld [vmem:[%s3109_s0 + $0x60] sm:$0xff]  ;;  %v2514_v21 = vmov 1.0  }
  0x30   :  { %2196 = vmatpush3.bf16.msra.mxu0 %v2193_v13  ;;  %v95_v27 = vld [vmem:[%s3109_s0 + $0x68] sm:$0xff]  ;;  %v2209_v29 = vpack.c.bf16 %v317_v26, %v316_v25  ;;  %v318_v30 = vld [vmem:[%s3112_s3 + $0x50] sm:$0xff]  ;;  %v319_v31 = vld [vmem:[%s3112_s3 + $0x58] sm:$0xff] }
  0x31   :  { %2198 = vmatprep.subr.bf16.mxu0 %v2197_v14  ;;  %v97_v32 = vld [vmem:[%s3109_s0 + $0x78] sm:$0xff]  ;;  %v96_v33 = vld [vmem:[%s3109_s0 + $0x70] sm:$0xff]  ;;  %v2213_v34 = vpack.c.bf16 %v319_v31, %v318_v30  ;;  %v320_v35 = vld [vmem:[%s3112_s3 + $0x60] sm:$0xff] }
  0x32   :  { %132 = vperm.xlu1 %2352, %v87_v5   ;;  %129 = vperm.xlu0 %2351, %v86_v6   ;;  %v321_v36 = vld [vmem:[%s3112_s3 + $0x68] sm:$0xff]  ;;  %v98_v38 = vld [vmem:[%s3110_s1] sm:$0xff]  ;;  %v322_v40 = vld [vmem:[%s3112_s3 + $0x70] sm:$0xff] }
  0x33   :  { %v99_v37 = vld [vmem:[%s3110_s1 + $0x8] sm:$0xff]  ;;  %v2217_v39 = vpack.c.bf16 %v321_v36, %v320_v35  ;;  %v323_v41 = vld [vmem:[%s3112_s3 + $0x78] sm:$0xff]  ;;  %v100_v43 = vld [vmem:[%s3110_s1 + $0x10] sm:$0xff] }
  0x34   :  { %2200 = vmatpush3.bf16.msra.mxu0 %v2197_v14  ;;  %v101_v42 = vld [vmem:[%s3110_s1 + $0x18] sm:$0xff]  ;;  %v2221_v44 = vpack.c.bf16 %v323_v41, %v322_v40  ;;  %v103_v45 = vld [vmem:[%s3110_s1 + $0x28] sm:$0xff]  ;;  %v102_v46 = vld [vmem:[%s3110_s1 + $0x20] sm:$0xff] }
  0x35   :  { %2202 = vmatprep.subr.bf16.mxu0 %v2201_v19  ;;  %v105_v47 = vld [vmem:[%s3110_s1 + $0x38] sm:$0xff]  ;;  %v104_v48 = vld [vmem:[%s3110_s1 + $0x30] sm:$0xff]  ;;  %v107_v49 = vld [vmem:[%s3110_s1 + $0x48] sm:$0xff] }
  0x36   :  { %138 = vperm.xlu1 %2352, %v89_v7   ;;  %135 = vperm.xlu0 %2351, %v88_v8   ;;  %v106_v50 = vld [vmem:[%s3110_s1 + $0x40] sm:$0xff]  ;;  %v109_v51 = vld [vmem:[%s3110_s1 + $0x58] sm:$0xff]  ;;  %v108_v52 = vld [vmem:[%s3110_s1 + $0x50] sm:$0xff] }
  0x37   :  { %v111_v53 = vld [vmem:[%s3110_s1 + $0x68] sm:$0xff]  ;;  %v110_v54 = vld [vmem:[%s3110_s1 + $0x60] sm:$0xff]  ;;  %v113_v55 = vld [vmem:[%s3110_s1 + $0x78] sm:$0xff] }
  0x38   :  { %2204 = vmatpush3.bf16.msra.mxu0 %v2201_v19  ;;  %v112_v56 = vld [vmem:[%s3110_s1 + $0x70] sm:$0xff]  ;;  %v549_v57 = vld [vmem:[%s3113_s4] sm:$0xff]  ;;  %v550_v58 = vld [vmem:[%s3113_s4 + $0x8] sm:$0xff] }
  0x39   :  { %2206 = vmatprep.subr.bf16.mxu0 %v2205_v24  ;;  %v551_v59 = vld [vmem:[%s3113_s4 + $0x10] sm:$0xff]  ;;  %v2225_v60 = vpack.c.bf16 %v550_v58, %v549_v57  ;;  %v552_v61 = vld [vmem:[%s3113_s4 + $0x18] sm:$0xff]  ;;  %v553_v63 = vld [vmem:[%s3113_s4 + $0x20] sm:$0xff] }
  0x3a   :  { %144 = vperm.xlu1 %2352, %v91_v17   ;;  %141 = vperm.xlu0 %2351, %v90_v18   ;;  %v2229_v62 = vpack.c.bf16 %v552_v61, %v551_v59  ;;  %v554_v0 = vld [vmem:[%s3113_s4 + $0x28] sm:$0xff]  ;;  %v555_v2 = vld [vmem:[%s3113_s4 + $0x30] sm:$0xff]  ;;  %v556_v3 = vld [vmem:[%s3113_s4 + $0x38] sm:$0xff]  ;;  %v114_v17 = vlaneseq }
  0x3b   :  { %2226 = vmatprep.subr.bf16.mxu1 %v2225_v60  ;;  %v2233_v1 = vpack.c.bf16 %v554_v0, %v553_v63  ;;  %v2237_v4 = vpack.c.bf16 %v556_v3, %v555_v2  ;;  %v557_v5 = vld [vmem:[%s3113_s4 + $0x40] sm:$0xff]  ;;  %v558_v6 = vld [vmem:[%s3113_s4 + $0x48] sm:$0xff]  ;;  %v559_v8 = vld [vmem:[%s3113_s4 + $0x50] sm:$0xff] }
  0x3c   :  { %2208 = vmatpush3.bf16.msra.mxu0 %v2205_v24  ;;  %2228 = vmatpush3.bf16.msra.mxu1 %v2225_v60  ;;  %v2241_v7 = vpack.c.bf16 %v558_v6, %v557_v5  ;;  %v560_v9 = vld [vmem:[%s3113_s4 + $0x58] sm:$0xff]  ;;  %v561_v11 = vld [vmem:[%s3113_s4 + $0x60] sm:$0xff]  ;;  %v562_v12 = vld [vmem:[%s3113_s4 + $0x68] sm:$0xff]  ;;  %v2798_v18 = vand.u32 127, %v114_v17 }
  0x3d   :  { %2210 = vmatprep.subr.bf16.mxu0 %v2209_v29  ;;  %2230 = vmatprep.subr.bf16.mxu1 %v2229_v62  ;;  %v2245_v10 = vpack.c.bf16 %v560_v9, %v559_v8  ;;  %v2249_v13 = vpack.c.bf16 %v562_v12, %v561_v11  ;;  %v563_v14 = vld [vmem:[%s3113_s4 + $0x70] sm:$0xff]  ;;  %v564_v15 = vld [vmem:[%s3113_s4 + $0x78] sm:$0xff]  ;;  %v714_v63 = vld [vmem:[#allocation2 + $0x20] sm:$0xff] }
  0x3e   :  { %150 = vperm.xlu1 %2352, %v93_v22   ;;  %147 = vperm.xlu0 %2351, %v92_v23   ;;  %v2253_v16 = vpack.c.bf16 %v564_v15, %v563_v14  ;;  %v712_v58 = vld [vmem:[#allocation2 + $0x10] sm:$0xff]  ;;  %v713_v59 = vld [vmem:[#allocation2 + $0x18] sm:$0xff]  ;;  %v715_v0 = vld [vmem:[#allocation2 + $0x28] sm:$0xff] }
  0x3f   :  { %v2265_v3 = vpack.c.bf16 %v715_v0, %v714_v63  ;;  %v717_v5 = vld [vmem:[#allocation2 + $0x38] sm:$0xff]  ;;  %v718_v9 = vld [vmem:[#allocation2 + $0x40] sm:$0xff]  ;;  %v720_v14 = vld [vmem:[#allocation2 + $0x50] sm:$0xff] }
  0x40   :  { %2212 = vmatpush3.bf16.msra.mxu0 %v2209_v29  ;;  %2232 = vmatpush3.bf16.msra.mxu1 %v2229_v62  ;;  %v2261_v62 = vpack.c.bf16 %v713_v59, %v712_v58  ;;  %v721_v15 = vld [vmem:[#allocation2 + $0x58] sm:$0xff]  ;;  %v895_v59 = vld [vmem:[#allocation5 + $0x40] sm:$0xff] }
  0x41   :  { %2214 = vmatprep.subr.bf16.mxu0 %v2213_v34  ;;  %2234 = vmatprep.subr.bf16.mxu1 %v2233_v1  ;;  %v898_v63 = vld [vmem:[#allocation5 + $0x58] sm:$0xff] }
  0x42   :  { %156 = vperm.xlu1 %2352, %v95_v27   ;;  %153 = vperm.xlu0 %2351, %v94_v28  }
  0x44   :  { %2216 = vmatpush3.bf16.msra.mxu0 %v2213_v34  ;;  %2236 = vmatpush3.bf16.msra.mxu1 %v2233_v1 }
  0x45   :  { %2218 = vmatprep.subr.bf16.mxu0 %v2217_v39  ;;  %2238 = vmatprep.subr.bf16.mxu1 %v2237_v4 }
  0x46   :  { %162 = vperm.xlu1 %2352, %v97_v32   ;;  %159 = vperm.xlu0 %2351, %v96_v33  }
  0x48   :  { %2220 = vmatpush3.bf16.msra.mxu0 %v2217_v39  ;;  %2240 = vmatpush3.bf16.msra.mxu1 %v2237_v4  ;;  %v716_v4 = vld [vmem:[#allocation2 + $0x30] sm:$0xff] }
  0x49   :  { %2222 = vmatprep.subr.bf16.mxu0 %v2221_v44  ;;  %2242 = vmatprep.subr.bf16.mxu1 %v2241_v7  ;;  %v2269_v8 = vpack.c.bf16 %v717_v5, %v716_v4  ;;  %v901_v4 = vld [vmem:[#allocation5 + $0x70] sm:$0xff]  ;;  %v902_v5 = vld [vmem:[#allocation5 + $0x78] sm:$0xff] }
  0x4a   :  { %168 = vperm.xlu1 %2352, %v99_v37   ;;  %165 = vperm.xlu0 %2351, %v98_v38  }
  0x4c   :  { %2224 = vmatpush3.bf16.msra.mxu0 %v2221_v44  ;;  %2244 = vmatpush3.bf16.msra.mxu1 %v2241_v7 }
  0x4d   :  { %2246 = vmatprep.subr.bf16.mxu1 %v2245_v10 }
  0x4e   :  { %174 = vperm.xlu1 %2352, %v101_v42   ;;  %171 = vperm.xlu0 %2351, %v100_v43  }
  0x50   :  { %2248 = vmatpush3.bf16.msra.mxu1 %v2245_v10  ;;  %v719_v10 = vld [vmem:[#allocation2 + $0x48] sm:$0xff] }
  0x51   :  { %2250 = vmatprep.subr.bf16.mxu1 %v2249_v13 }
  0x52   :  { %180 = vperm.xlu1 %2352, %v103_v45   ;;  %177 = vperm.xlu0 %2351, %v102_v46  }
  0x54   :  { %2252 = vmatpush3.bf16.msra.mxu1 %v2249_v13  ;;  %v2273_v13 = vpack.c.bf16 %v719_v10, %v718_v9 }
  0x55   :  { %2254 = vmatprep.subr.bf16.mxu1 %v2253_v16 }
  0x56   :  { %186 = vperm.xlu1 %2352, %v105_v47   ;;  %183 = vperm.xlu0 %2351, %v104_v48  }
  0x58   :  { %2256 = vmatpush3.bf16.msra.mxu1 %v2253_v16 }
  0x5a   :  { %192 = vperm.xlu1 %2352, %v107_v49   ;;  %189 = vperm.xlu0 %2351, %v106_v50  }
  0x5e   :  { %198 = vperm.xlu1 %2352, %v109_v51   ;;  %195 = vperm.xlu0 %2351, %v108_v52   ;;  %v710_v52 = vld [vmem:[#allocation2] sm:$0xff] }
  0x62   :  { %204 = vperm.xlu1 %2352, %v111_v53   ;;  %201 = vperm.xlu0 %2351, %v110_v54   ;;  %v711_v53 = vld [vmem:[#allocation2 + $0x8] sm:$0xff] }
  0x63   :  { %v2257_v54 = vpack.c.bf16 %v711_v53, %v710_v52  ;;  %v891_v53 = vld [vmem:[#allocation5 + $0x20] sm:$0xff] }
  0x65   :  { %2258 = vmatprep.subr.bf16.mxu1 %v2257_v54 }
  0x66   :  { %210 = vperm.xlu1 %2352, %v113_v55   ;;  %207 = vperm.xlu0 %2351, %v112_v56   ;;  %v887_v55 = vld [vmem:[#allocation5] sm:$0xff]  ;;  %v888_v56 = vld [vmem:[#allocation5 + $0x8] sm:$0xff] }
  0x67   :  { %v2289_v57 = vpack.c.bf16 %v888_v56, %v887_v55  ;;  %v893_v56 = vld [vmem:[#allocation5 + $0x30] sm:$0xff] }
  0x69   :  { %2290 = vmatprep.subr.bf16.mxu0 %v2289_v57 }
  0xa9   :  { %v124_v19 = vpop.permute.xlu1 %123  ;;  %v118_v20 = vpop.permute.xlu0 %117 }
  0xaa   :  { %vm212_vm0 = vcmp.eq.s32.totalorder %v2798_v18, %v118_v20  ;;  %vm214_vm1 = vcmp.eq.s32.totalorder %v2798_v18, %v124_v19  ;;  %v2277_v20 = vpack.c.bf16 %v721_v15, %v720_v14 }
  0xab   :  { %1941 = vmatprep.mubr.msk.f32.mxu0 %vm212_vm0, %v2514_v21 }
  0xad   :  { %v127_v22 = vpop.permute.xlu1 %126  ;;  %v121_v23 = vpop.permute.xlu0 %120 }
  0xae   :  { %vm213_vm2 = vcmp.eq.s32.totalorder %v2798_v18, %v121_v23  ;;  %vm215_vm3 = vcmp.eq.s32.totalorder %v2798_v18, %v127_v22  ;;  %v722_v22 = vld [vmem:[#allocation2 + $0x60] sm:$0xff]  ;;  %v723_v23 = vld [vmem:[#allocation2 + $0x68] sm:$0xff] }
  0xaf   :  { %1942 = vmatmul.mubr.msk.f32.vlgmr.msra.gmra.mrb[0].mxu0 %vm213_vm2, %v2514_v21 }
  0xb0   :  { %1944 = vmatprep.mubr.msk.f32.mxu0 %vm214_vm1, %v2514_v21  ;;  %2292 = vmatpush3.bf16.msra.mxu0 %v2289_v57  ;;  %v894_v57 = vld [vmem:[#allocation5 + $0x38] sm:$0xff] }
  0xb1   :  { %v133_v24 = vpop.permute.xlu1 %132  ;;  %v130_v25 = vpop.permute.xlu0 %129  ;;  %v2301_v58 = vpack.c.bf16 %v894_v57, %v893_v56 }
  0xb2   :  { %vm216_vm4 = vcmp.eq.s32.totalorder %v2798_v18, %v130_v25  ;;  %vm217_vm5 = vcmp.eq.s32.totalorder %v2798_v18, %v133_v24 }
  0xb3   :  { %1945 = vmatmul.mubr.msk.f32.gmra.mrb[2].mxu0 %vm215_vm3, %v2514_v21 }
  0xb4   :  { %1947 = vmatprep.mubr.msk.f32.mxu0 %vm216_vm4, %v2514_v21 }
  0xb5   :  { %v139_v26 = vpop.permute.xlu1 %138  ;;  %v136_v27 = vpop.permute.xlu0 %135 }
  0xb6   :  { %vm218_vm6 = vcmp.eq.s32.totalorder %v2798_v18, %v136_v27  ;;  %vm219_vm7 = vcmp.eq.s32.totalorder %v2798_v18, %v139_v26  ;;  %v2281_v26 = vpack.c.bf16 %v723_v23, %v722_v22  ;;  %v724_v27 = vld [vmem:[#allocation2 + $0x70] sm:$0xff] }
  0xb7   :  { %1948 = vmatmul.mubr.msk.f32.gmra.mrb[4].mxu0 %vm217_vm5, %v2514_v21 }
  0xb8   :  { %1950 = vmatprep.mubr.msk.f32.mxu0 %vm218_vm6, %v2514_v21 }
  0xb9   :  { %v145_v28 = vpop.permute.xlu1 %144  ;;  %v142_v29 = vpop.permute.xlu0 %141 }
  0xba   :  { %vm220_vm8 = vcmp.eq.s32.totalorder %v2798_v18, %v142_v29  ;;  %vm221_vm9 = vcmp.eq.s32.totalorder %v2798_v18, %v145_v28  ;;  %v725_v28 = vld [vmem:[#allocation2 + $0x78] sm:$0xff] }
  0xbb   :  { %1951 = vmatmul.mubr.msk.f32.gmra.mrb[6].mxu0 %vm219_vm7, %v2514_v21 }
  0xbc   :  { %1953 = vmatprep.mubr.msk.f32.mxu0 %vm220_vm8, %v2514_v21 }
  0xbd   :  { %v151_v30 = vpop.permute.xlu1 %150  ;;  %v148_v31 = vpop.permute.xlu0 %147 }
  0xbe   :  { %vm222_vm10 = vcmp.eq.s32.totalorder %v2798_v18, %v148_v31  ;;  %vm223_vm11 = vcmp.eq.s32.totalorder %v2798_v18, %v151_v30  ;;  %v2285_v31 = vpack.c.bf16 %v725_v28, %v724_v27 }
  0xbf   :  { %1954 = vmatmul.mubr.msk.f32.gmra.mrb[8].mxu0 %vm221_vm9, %v2514_v21 }
  0xc0   :  { %1956 = vmatprep.mubr.msk.f32.mxu0 %vm222_vm10, %v2514_v21 }
  0xc1   :  { %v157_v32 = vpop.permute.xlu1 %156  ;;  %v154_v33 = vpop.permute.xlu0 %153 }
  0xc2   :  { %vm224_vm12 = vcmp.eq.s32.totalorder %v2798_v18, %v154_v33  ;;  %vm225_vm13 = vcmp.eq.s32.totalorder %v2798_v18, %v157_v32 }
  0xc3   :  { %1957 = vmatmul.mubr.msk.f32.gmra.mrb[10].mxu0 %vm223_vm11, %v2514_v21 }
  0xc4   :  { %1959 = vmatprep.mubr.msk.f32.mxu0 %vm224_vm12, %v2514_v21 }
  0xc5   :  { %v163_v34 = vpop.permute.xlu1 %162  ;;  %v160_v35 = vpop.permute.xlu0 %159 }
  0xc6   :  { %vm226_vm14 = vcmp.eq.s32.totalorder %v2798_v18, %v160_v35  ;;  %vm227_vm15 = vcmp.eq.s32.totalorder %v2798_v18, %v163_v34 }
  0xc7   :  { %1960 = vmatmul.mubr.msk.f32.gmra.mrb[12].mxu0 %vm225_vm13, %v2514_v21 }
  0xc8   :  { %1962 = vmatprep.mubr.msk.f32.mxu0 %vm226_vm14, %v2514_v21 }
  0xc9   :  { %v169_v36 = vpop.permute.xlu1 %168  ;;  %v166_v37 = vpop.permute.xlu0 %165 }
  0xca   :  { %vm228_vm0 = vcmp.eq.s32.totalorder %v2798_v18, %v166_v37  ;;  %vm229_vm1 = vcmp.eq.s32.totalorder %v2798_v18, %v169_v36 }
  0xcb   :  { %1963 = vmatmul.mubr.msk.f32.gmra.mrb[14].mxu0 %vm227_vm15, %v2514_v21 }
  0xcc   :  { %1965 = vmatprep.mubr.msk.f32.mxu0 %vm228_vm0, %v2514_v21 }
  0xcd   :  { %v175_v38 = vpop.permute.xlu1 %174  ;;  %v172_v39 = vpop.permute.xlu0 %171 }
  0xce   :  { %vm230_vm2 = vcmp.eq.s32.totalorder %v2798_v18, %v172_v39  ;;  %vm231_vm3 = vcmp.eq.s32.totalorder %v2798_v18, %v175_v38 }
  0xcf   :  { %1966 = vmatmul.mubr.msk.f32.gmra.mrb[16].mxu0 %vm229_vm1, %v2514_v21 }
  0xd0   :  { %1968 = vmatprep.mubr.msk.f32.mxu0 %vm230_vm2, %v2514_v21 }
  0xd1   :  { %v181_v40 = vpop.permute.xlu1 %180  ;;  %v178_v41 = vpop.permute.xlu0 %177 }
  0xd2   :  { %vm232_vm4 = vcmp.eq.s32.totalorder %v2798_v18, %v178_v41  ;;  %vm233_vm5 = vcmp.eq.s32.totalorder %v2798_v18, %v181_v40 }
  0xd3   :  { %1969 = vmatmul.mubr.msk.f32.gmra.mrb[18].mxu0 %vm231_vm3, %v2514_v21 }
  0xd4   :  { %1971 = vmatprep.mubr.msk.f32.mxu0 %vm232_vm4, %v2514_v21 }
  0xd5   :  { %v187_v42 = vpop.permute.xlu1 %186  ;;  %v184_v43 = vpop.permute.xlu0 %183 }
  0xd6   :  { %vm234_vm6 = vcmp.eq.s32.totalorder %v2798_v18, %v184_v43  ;;  %vm235_vm7 = vcmp.eq.s32.totalorder %v2798_v18, %v187_v42 }
  0xd7   :  { %1972 = vmatmul.mubr.msk.f32.gmra.mrb[20].mxu0 %vm233_vm5, %v2514_v21 }
  0xd8   :  { %1974 = vmatprep.mubr.msk.f32.mxu0 %vm234_vm6, %v2514_v21 }
  0xd9   :  { %v193_v44 = vpop.permute.xlu1 %192  ;;  %v190_v45 = vpop.permute.xlu0 %189 }
  0xda   :  { %vm236_vm8 = vcmp.eq.s32.totalorder %v2798_v18, %v190_v45  ;;  %vm237_vm9 = vcmp.eq.s32.totalorder %v2798_v18, %v193_v44 }
  0xdb   :  { %1975 = vmatmul.mubr.msk.f32.gmra.mrb[22].mxu0 %vm235_vm7, %v2514_v21 }
  0xdc   :  { %1977 = vmatprep.mubr.msk.f32.mxu0 %vm236_vm8, %v2514_v21 }
  0xdd   :  { %v199_v46 = vpop.permute.xlu1 %198  ;;  %v196_v47 = vpop.permute.xlu0 %195 }
  0xde   :  { %vm238_vm10 = vcmp.eq.s32.totalorder %v2798_v18, %v196_v47  ;;  %vm239_vm11 = vcmp.eq.s32.totalorder %v2798_v18, %v199_v46 }
  0xdf   :  { %1978 = vmatmul.mubr.msk.f32.gmra.mrb[24].mxu0 %vm237_vm9, %v2514_v21 }
  0xe0   :  { %1980 = vmatprep.mubr.msk.f32.mxu0 %vm238_vm10, %v2514_v21 }
  0xe1   :  { %v205_v48 = vpop.permute.xlu1 %204  ;;  %v202_v49 = vpop.permute.xlu0 %201 }
  0xe2   :  { %vm240_vm12 = vcmp.eq.s32.totalorder %v2798_v18, %v202_v49  ;;  %vm241_vm13 = vcmp.eq.s32.totalorder %v2798_v18, %v205_v48 }
  0xe3   :  { %1981 = vmatmul.mubr.msk.f32.gmra.mrb[26].mxu0 %vm239_vm11, %v2514_v21 }
  0xe4   :  { %1983 = vmatprep.mubr.msk.f32.mxu0 %vm240_vm12, %v2514_v21  ;;  %vm1096_vm12 = vcmp.lt.s32.totalorder %v2798_v18, 4 }
  0xe5   :  { %v208_v50 = vpop.permute.xlu0 %207  ;;  %v211_v51 = vpop.permute.xlu1 %210 }
  0xe6   :  { %vm242_vm14 = vcmp.eq.s32.totalorder %v2798_v18, %v208_v50  ;;  %vm243_vm15 = vcmp.eq.s32.totalorder %v2798_v18, %v211_v51  ;;  %v889_v50 = vld [vmem:[#allocation5 + $0x10] sm:$0xff]  ;;  %v890_v51 = vld [vmem:[#allocation5 + $0x18] sm:$0xff] }
  0xe7   :  { %1984 = vmatmul.mubr.msk.f32.gmra.mrb[28].mxu0 %vm241_vm13, %v2514_v21  ;;  %v2293_v52 = vpack.c.bf16 %v890_v51, %v889_v50 }
  0xe8   :  { %1986 = vmatprep.mubr.msk.f32.mxu0 %vm242_vm14, %v2514_v21 }
  0xe9   :  { %2294 = vmatprep.subr.bf16.mxu0 %v2293_v52 }
  0xea   :  { %2296 = vmatpush3.bf16.msra.mxu0 %v2293_v52 }
  0xeb   :  { %1987 = vmatmul.mubr.msk.f32.gmra.mrb[30].mxu0 %vm243_vm15, %v2514_v21 }
 0x182   :  { %v1943_v60 = vpop.f32.mrb[0].mxu0 }
 0x183   :  { %1197 = vst [vmem:[#allocation8 + $0x8] sm:$0xff] %v1943_v60  ;;  %v390_v61 = vpop.f32.mrb[1].mxu0 }
 0x184   :  { %1196 = vst [vmem:[#allocation8] sm:$0xff] %v390_v61  ;;  %2021 = vmatprep.mubr.f32.mxu1 %v390_v61 }
 0x185   :  { %2022 = vmatmul.mubr.f32.vlgmr.msra.gmra.mrb[0].mxu1 %v1943_v60  ;;  %v896_v60 = vld [vmem:[#allocation5 + $0x48] sm:$0xff] }
 0x186   :  { %v1946_v1 = vpop.f32.mrb[2].mxu0  ;;  %2260 = vmatpush3.bf16.msra.mxu1 %v2257_v54  ;;  %v892_v54 = vld [vmem:[#allocation5 + $0x28] sm:$0xff]  ;;  %v2305_v61 = vpack.c.bf16 %v896_v60, %v895_v59  ;;  %v2865_v59 = vshrl.u32 %v114_v17, 7  ;;  %v2870_v60 = vld [vmem:[%s3111_s2] ss:$0 sm:$0xff]  ;;  %s2516_s2 = smov [#allocation8]  }
 0x187   :  { %1199 = vst [vmem:[#allocation8 + $0x18] sm:$0xff] %v1946_v1  ;;  %v400_v2 = vpop.f32.mrb[3].mxu0  ;;  %2262 = vmatprep.subr.bf16.mxu1 %v2261_v62  ;;  %v2297_v55 = vpack.c.bf16 %v892_v54, %v891_v53  ;;  %s1594_s19 = sshll.u32 %s2516_s2, 4  ;;  %s1595_s19 = int_to_ptr.vmem [resolvable:$true] %s1594_s19 }
 0x188   :  { %1198 = vst [vmem:[#allocation8 + $0x10] sm:$0xff] %v400_v2  ;;  %2024 = vmatprep.mubr.f32.mxu1 %v400_v2  ;;  %v900_v2 = vld [vmem:[#allocation5 + $0x68] sm:$0xff]  ;;  %vm1310_vm0 = vcmp.eq.s32.totalorder %v2865_v59, %v2870_v60  ;;  %v2884_v17 = vadd.s32 24, %v2865_v59  ;;  %s2411_s0 = scalar_lea.vmem %s1595_s19, 2048  ;;  %p2416_p3 = scmp.lt.s32.totalorder %s1595_s19, %s1595_s19 }
 0x189   :  { %2025 = vmatmul.mubr.f32.gmra.mrb[2].mxu1 %v1946_v1  ;;  %2298 = vmatprep.subr.bf16.mxu0 %v2297_v55  ;;  %v899_v1 = vld [vmem:[#allocation5 + $0x60] sm:$0xff]  ;;  %p2412_p2 = scmp.ne.s32.totalorder %s1595_s19, %s2411_s0  ;;  %p2417_p4 = scmp.lt.s32.totalorder %s2411_s0, %s2411_s0 }
 0x18a   :  { %v1949_v6 = vpop.f32.mrb[4].mxu0  ;;  %2264 = vmatpush3.bf16.msra.mxu1 %v2261_v62  ;;  %2300 = vmatpush3.bf16.msra.mxu0 %v2297_v55  ;;  %v897_v62 = vld [vmem:[#allocation5 + $0x50] sm:$0xff]  ;;  %vm1313_vm3 = vcmp.eq.s32.totalorder %v2884_v17, %v2870_v60 }
 0x18b   :  { %1201 = vst [vmem:[#allocation8 + $0x28] sm:$0xff] %v1949_v6  ;;  %v410_v7 = vpop.f32.mrb[5].mxu0  ;;  %2266 = vmatprep.subr.bf16.mxu1 %v2265_v3  ;;  %2302 = vmatprep.subr.bf16.mxu0 %v2301_v58  ;;  %v2309_v0 = vpack.c.bf16 %v898_v63, %v897_v62  ;;  %v2881_v62 = vadd.s32 16, %v2865_v59  ;;  %v2891_v63 = vadd.s32 32, %v2865_v59  ;;  %p2418_p5 = por %p2417_p4, %p2416_p3 }
 0x18c   :  { %1200 = vst [vmem:[#allocation8 + $0x20] sm:$0xff] %v410_v7  ;;  %2027 = vmatprep.mubr.f32.mxu1 %v410_v7 }
 0x18d   :  { %2028 = vmatmul.mubr.f32.gmra.mrb[4].mxu1 %v1949_v6  ;;  %v2317_v6 = vpack.c.bf16 %v902_v5, %v901_v4  ;;  %vm1312_vm2 = vcmp.eq.s32.totalorder %v2881_v62, %v2870_v60  ;;  %vm1314_vm4 = vcmp.eq.s32.totalorder %v2891_v63, %v2870_v60  ;;  %v2914_v4 = vadd.s32 72, %v2865_v59  ;;  %p2419_p6 = pnand %p2418_p5, %p2412_p2 }
 0x18e   :  { %v1952_v11 = vpop.f32.mrb[6].mxu0  ;;  %2268 = vmatpush3.bf16.msra.mxu1 %v2265_v3  ;;  %2304 = vmatpush3.bf16.msra.mxu0 %v2301_v58  ;;  %v2313_v3 = vpack.c.bf16 %v900_v2, %v899_v1  ;;  %v2515_v58 = vmov -1e+30   ;;  %v2901_v1 = vadd.s32 48, %v2865_v59  ;;  %v2904_v2 = vadd.s32 56, %v2865_v59 }
 0x18f   :  { %1203 = vst [vmem:[#allocation8 + $0x38] sm:$0xff] %v1952_v11  ;;  %v420_v12 = vpop.f32.mrb[7].mxu0  ;;  %2270 = vmatprep.subr.bf16.mxu1 %v2269_v8  ;;  %2306 = vmatprep.subr.bf16.mxu0 %v2305_v61  ;;  %81 = vst [vmem:[#allocation11] sm:$0x1] %v2515_v58  ;;  %vm1319_vm9 = vcmp.eq.s32.totalorder %v2914_v4, %v2870_v60  ;;  %v2921_v5 = vadd.s32 80, %v2865_v59 }
 0x190   :  { %1202 = vst [vmem:[#allocation8 + $0x30] sm:$0xff] %v420_v12  ;;  %2030 = vmatprep.mubr.f32.mxu1 %v420_v12  ;;  %1186 = vst [vmem:[#allocation7 + $0x30] sm:$0xff] %v2515_v58  ;;  %vm1316_vm6 = vcmp.eq.s32.totalorder %v2901_v1, %v2870_v60  ;;  %vm1317_vm7 = vcmp.eq.s32.totalorder %v2904_v2, %v2870_v60 }
 0x191   :  { %2031 = vmatmul.mubr.f32.gmra.mrb[6].mxu1 %v1952_v11  ;;  %1187 = vst [vmem:[#allocation7 + $0x38] sm:$0xff] %v2515_v58  ;;  %1188 = vst [vmem:[#allocation7 + $0x40] sm:$0xff] %v2515_v58  ;;  %vm1320_vm10 = vcmp.eq.s32.totalorder %v2921_v5, %v2870_v60 }
 0x192   :  { %v1955_v16 = vpop.f32.mrb[8].mxu0  ;;  %2272 = vmatpush3.bf16.msra.mxu1 %v2269_v8  ;;  %2308 = vmatpush3.bf16.msra.mxu0 %v2305_v61  ;;  %1189 = vst [vmem:[#allocation7 + $0x48] sm:$0xff] %v2515_v58  ;;  %1190 = vst [vmem:[#allocation7 + $0x50] sm:$0xff] %v2515_v58  ;;  %v2873_v61 = vadd.s32 8, %v2865_v59 }
 0x193   :  { %1205 = vst [vmem:[#allocation8 + $0x48] sm:$0xff] %v1955_v16  ;;  %v430_v19 = vpop.f32.mrb[9].mxu0  ;;  %2274 = vmatprep.subr.bf16.mxu1 %v2273_v13  ;;  %2310 = vmatprep.subr.bf16.mxu0 %v2309_v0  ;;  %1191 = vst [vmem:[#allocation7 + $0x58] sm:$0xff] %v2515_v58 }
 0x194   :  { %1204 = vst [vmem:[#allocation8 + $0x40] sm:$0xff] %v430_v19  ;;  %2033 = vmatprep.mubr.f32.mxu1 %v430_v19  ;;  %1192 = vst [vmem:[#allocation7 + $0x60] sm:$0xff] %v2515_v58  ;;  %vm1311_vm1 = vcmp.eq.s32.totalorder %v2873_v61, %v2870_v60 }
 0x195   :  { %2034 = vmatmul.mubr.f32.gmra.mrb[8].mxu1 %v1955_v16  ;;  %1193 = vst [vmem:[#allocation7 + $0x68] sm:$0xff] %v2515_v58  ;;  %1194 = vst [vmem:[#allocation7 + $0x70] sm:$0xff] %v2515_v58 }
 0x196   :  { %v1958_v24 = vpop.f32.mrb[10].mxu0  ;;  %2276 = vmatpush3.bf16.msra.mxu1 %v2273_v13  ;;  %2312 = vmatpush3.bf16.msra.mxu0 %v2309_v0  ;;  %1195 = vst [vmem:[#allocation7 + $0x78] sm:$0xff] %v2515_v58  ;;  %v2894_v0 = vadd.s32 40, %v2865_v59 }
 0x197   :  { %1207 = vst [vmem:[#allocation8 + $0x58] sm:$0xff] %v1958_v24  ;;  %v440_v25 = vpop.f32.mrb[11].mxu0  ;;  %2278 = vmatprep.subr.bf16.mxu1 %v2277_v20  ;;  %2314 = vmatprep.subr.bf16.mxu0 %v2313_v3 }
 0x198   :  { %1206 = vst [vmem:[#allocation8 + $0x50] sm:$0xff] %v440_v25  ;;  %2036 = vmatprep.mubr.f32.mxu1 %v440_v25  ;;  %vm1315_vm5 = vcmp.eq.s32.totalorder %v2894_v0, %v2870_v60 }
 0x199   :  { %2037 = vmatmul.mubr.f32.gmra.mrb[10].mxu1 %v1958_v24 }
 0x19a   :  { %v1961_v29 = vpop.f32.mrb[12].mxu0  ;;  %2280 = vmatpush3.bf16.msra.mxu1 %v2277_v20  ;;  %2316 = vmatpush3.bf16.msra.mxu0 %v2313_v3  ;;  %v2911_v3 = vadd.s32 64, %v2865_v59 }
 0x19b   :  { %1209 = vst [vmem:[#allocation8 + $0x68] sm:$0xff] %v1961_v29  ;;  %v450_v30 = vpop.f32.mrb[13].mxu0  ;;  %2282 = vmatprep.subr.bf16.mxu1 %v2281_v26  ;;  %2318 = vmatprep.subr.bf16.mxu0 %v2317_v6 }
 0x19c   :  { %1208 = vst [vmem:[#allocation8 + $0x60] sm:$0xff] %v450_v30  ;;  %2039 = vmatprep.mubr.f32.mxu1 %v450_v30  ;;  %vm1318_vm8 = vcmp.eq.s32.totalorder %v2911_v3, %v2870_v60 }
 0x19d   :  { %2040 = vmatmul.mubr.f32.gmra.mrb[12].mxu1 %v1961_v29 }
 0x19e   :  { %v1964_v32 = vpop.f32.mrb[14].mxu0  ;;  %2284 = vmatpush3.bf16.msra.mxu1 %v2281_v26  ;;  %2320 = vmatpush3.bf16.msra.mxu0 %v2317_v6  ;;  %v2924_v6 = vadd.s32 88, %v2865_v59 }
 0x19f   :  { %1211 = vst [vmem:[#allocation8 + $0x78] sm:$0xff] %v1964_v32  ;;  %v460_v33 = vpop.f32.mrb[15].mxu0  ;;  %2286 = vmatprep.subr.bf16.mxu1 %v2285_v31 }
 0x1a0   :  { %1210 = vst [vmem:[#allocation8 + $0x70] sm:$0xff] %v460_v33  ;;  %2042 = vmatprep.mubr.f32.mxu1 %v460_v33 }
 0x1a1   :  { %2043 = vmatmul.mubr.f32.gmra.mrb[14].mxu1 %v1964_v32 }
 0x1a2   :  { %v1967_v34 = vpop.f32.mrb[16].mxu0  ;;  %2288 = vmatpush3.bf16.msra.mxu1 %v2285_v31 }
 0x1a3   :  { %v470_v35 = vpop.f32.mrb[17].mxu0 }
 0x1a4   :  { %2077 = vmatprep.mubr.f32.mxu1 %v470_v35 }
 0x1a5   :  { %2078 = vmatmul.mubr.f32.vlgmr.msra.gmra.mrb[16].mxu1 %v1967_v34 }
 0x1a6   :  { %v1970_v36 = vpop.f32.mrb[18].mxu0 }
 0x1a7   :  { %v480_v37 = vpop.f32.mrb[19].mxu0 }
 0x1a8   :  { %2080 = vmatprep.mubr.f32.mxu1 %v480_v37 }
 0x1a9   :  { %2081 = vmatmul.mubr.f32.gmra.mrb[18].mxu1 %v1970_v36 }
 0x1aa   :  { %v1973_v38 = vpop.f32.mrb[20].mxu0 }
 0x1ab   :  { %v490_v39 = vpop.f32.mrb[21].mxu0 }
 0x1ac   :  { %2083 = vmatprep.mubr.f32.mxu1 %v490_v39 }
 0x1ad   :  { %2084 = vmatmul.mubr.f32.gmra.mrb[20].mxu1 %v1973_v38 }
 0x1ae   :  { %v1976_v40 = vpop.f32.mrb[22].mxu0 }
 0x1af   :  { %v500_v41 = vpop.f32.mrb[23].mxu0 }
 0x1b0   :  { %2086 = vmatprep.mubr.f32.mxu1 %v500_v41 }
 0x1b1   :  { %2087 = vmatmul.mubr.f32.gmra.mrb[22].mxu1 %v1976_v40 }
 0x1b2   :  { %v1979_v42 = vpop.f32.mrb[24].mxu0 }
 0x1b3   :  { %v510_v43 = vpop.f32.mrb[25].mxu0 }
 0x1b4   :  { %2089 = vmatprep.mubr.f32.mxu1 %v510_v43 }
 0x1b5   :  { %2090 = vmatmul.mubr.f32.gmra.mrb[24].mxu1 %v1979_v42 }
 0x1b6   :  { %v1982_v44 = vpop.f32.mrb[26].mxu0 }
 0x1b7   :  { %v520_v45 = vpop.f32.mrb[27].mxu0 }
 0x1b8   :  { %2092 = vmatprep.mubr.f32.mxu1 %v520_v45 }
 0x1b9   :  { %2093 = vmatmul.mubr.f32.gmra.mrb[26].mxu1 %v1982_v44 }
 0x1ba   :  { %v1985_v46 = vpop.f32.mrb[28].mxu0 }
 0x1bb   :  { %v530_v47 = vpop.f32.mrb[29].mxu0 }
 0x1bc   :  { %2095 = vmatprep.mubr.f32.mxu1 %v530_v47 }
 0x1bd   :  { %2096 = vmatmul.mubr.f32.gmra.mrb[28].mxu1 %v1985_v46 }
 0x1be   :  { %v1988_v48 = vpop.f32.mrb[30].mxu0 }
 0x1bf   :  { %v540_v49 = vpop.f32.mrb[31].mxu0 }
 0x1c0   :  { %2098 = vmatprep.mubr.f32.mxu1 %v540_v49 }
 0x1c1   :  { %2099 = vmatmul.mubr.f32.gmra.mrb[30].mxu1 %v1988_v48 }
 0x1c2   :  { %2169 = vmatprep.mubr.msk.f32.mxu1 %vm1310_vm0, %v2514_v21 }
 0x258   :  { %v2023_v7 = vpop.f32.mrb[0].mxu1 }
 0x259   :  { %v631_v8 = vpop.f32.mrb[1].mxu1 }
 0x25c   :  { %v2026_v9 = vpop.f32.mrb[2].mxu1 }
 0x25d   :  { %v641_v10 = vpop.f32.mrb[3].mxu1 }
 0x260   :  { %v2029_v11 = vpop.f32.mrb[4].mxu1 }
 0x261   :  { %v651_v12 = vpop.f32.mrb[5].mxu1 }
 0x264   :  { %v2032_v13 = vpop.f32.mrb[6].mxu1 }
 0x265   :  { %v661_v14 = vpop.f32.mrb[7].mxu1 }
 0x268   :  { %v2035_v15 = vpop.f32.mrb[8].mxu1 }
 0x269   :  { %v671_v16 = vpop.f32.mrb[9].mxu1 }
 0x26c   :  { %v2038_v19 = vpop.f32.mrb[10].mxu1 }
 0x26d   :  { %v681_v20 = vpop.f32.mrb[11].mxu1 }
 0x270   :  { %v2041_v22 = vpop.f32.mrb[12].mxu1 }
 0x271   :  { %v691_v23 = vpop.f32.mrb[13].mxu1 }
 0x274   :  { %v2044_v24 = vpop.f32.mrb[14].mxu1 }
 0x275   :  { %v701_v25 = vpop.f32.mrb[15].mxu1 }
 0x278   :  { %v2079_v26 = vpop.f32.mrb[16].mxu1 }
 0x279   :  { %v872_v27 = vmul.f32 %v2079_v26, %v2023_v7  ;;  %v792_v28 = vpop.f32.mrb[17].mxu1  ;;  %v2931_v7 = vadd.s32 96, %v2865_v59 }
 0x27a   :  { %v871_v29 = vmul.f32 %v792_v28, %v631_v8  ;;  %v2934_v8 = vadd.s32 104, %v2865_v59 }
 0x27c   :  { %v2082_v30 = vpop.f32.mrb[18].mxu1  ;;  %2133 = vmatprep.mubr.f32.mxu0 %v871_v29  ;;  %vm1323_vm13 = vcmp.eq.s32.totalorder %v2934_v8, %v2870_v60 }
 0x27d   :  { %v874_v31 = vmul.f32 %v2082_v30, %v2026_v9  ;;  %v802_v32 = vpop.f32.mrb[19].mxu1  ;;  %2134 = vmatmul.mubr.f32.vlgmr.msra.gmra.mrb[32].mxu0 %v872_v27  ;;  %v2941_v9 = vadd.s32 112, %v2865_v59 }
 0x27e   :  { %v873_v33 = vmul.f32 %v802_v32, %v641_v10  ;;  %v2944_v10 = vadd.s32 120, %v2865_v59 }
 0x280   :  { %v2085_v34 = vpop.f32.mrb[20].mxu1  ;;  %2136 = vmatprep.mubr.f32.mxu0 %v873_v33 }
 0x281   :  { %v876_v35 = vmul.f32 %v2085_v34, %v2029_v11  ;;  %v812_v36 = vpop.f32.mrb[21].mxu1  ;;  %2137 = vmatmul.mubr.f32.gmra.mrb[34].mxu0 %v874_v31 }
 0x282   :  { %v875_v37 = vmul.f32 %v812_v36, %v651_v12 }
 0x284   :  { %v2088_v38 = vpop.f32.mrb[22].mxu1  ;;  %2139 = vmatprep.mubr.f32.mxu0 %v875_v37 }
 0x285   :  { %v878_v39 = vmul.f32 %v2088_v38, %v2032_v13  ;;  %v822_v40 = vpop.f32.mrb[23].mxu1  ;;  %2140 = vmatmul.mubr.f32.gmra.mrb[36].mxu0 %v876_v35 }
 0x286   :  { %v877_v41 = vmul.f32 %v822_v40, %v661_v14 }
 0x288   :  { %v2091_v42 = vpop.f32.mrb[24].mxu1  ;;  %2142 = vmatprep.mubr.f32.mxu0 %v877_v41 }
 0x289   :  { %v880_v43 = vmul.f32 %v2091_v42, %v2035_v15  ;;  %v832_v44 = vpop.f32.mrb[25].mxu1  ;;  %2143 = vmatmul.mubr.f32.gmra.mrb[38].mxu0 %v878_v39 }
 0x28a   :  { %v879_v45 = vmul.f32 %v832_v44, %v671_v16 }
 0x28c   :  { %v2094_v46 = vpop.f32.mrb[26].mxu1  ;;  %2145 = vmatprep.mubr.f32.mxu0 %v879_v45 }
 0x28d   :  { %v882_v47 = vmul.f32 %v2094_v46, %v2038_v19  ;;  %v842_v48 = vpop.f32.mrb[27].mxu1  ;;  %2146 = vmatmul.mubr.f32.gmra.mrb[40].mxu0 %v880_v43 }
 0x28e   :  { %v881_v49 = vmul.f32 %v842_v48, %v681_v20 }
 0x290   :  { %v2097_v50 = vpop.f32.mrb[28].mxu1  ;;  %2148 = vmatprep.mubr.f32.mxu0 %v881_v49 }
 0x291   :  { %v884_v51 = vmul.f32 %v2097_v50, %v2041_v22  ;;  %v852_v52 = vpop.f32.mrb[29].mxu1  ;;  %2149 = vmatmul.mubr.f32.gmra.mrb[42].mxu0 %v882_v47 }
 0x292   :  { %v883_v53 = vmul.f32 %v852_v52, %v691_v23 }
 0x294   :  { %v2100_v54 = vpop.f32.mrb[30].mxu1  ;;  %2151 = vmatprep.mubr.f32.mxu0 %v883_v53 }
 0x295   :  { %v886_v55 = vmul.f32 %v2100_v54, %v2044_v24  ;;  %v862_v56 = vpop.f32.mrb[31].mxu1  ;;  %2152 = vmatmul.mubr.f32.gmra.mrb[44].mxu0 %v884_v51 }
 0x296   :  { %v885_v57 = vmul.f32 %v862_v56, %v701_v25 }
 0x298   :  { %2154 = vmatprep.mubr.f32.mxu0 %v885_v57 }
 0x299   :  { %2155 = vmatmul.mubr.f32.gmra.mrb[46].mxu0 %v886_v55 }
 0x350   :  { %v2135_v11 = vpop.f32.mrb[32].mxu0 }
 0x351   :  { %vm1049_vm0 = vcmp.ge.f32.partialorder %v2135_v11, 0.0  ;;  %v1065_v12 = vmul.f32 0.2, %v2135_v11  ;;  %v969_v13 = vpop.f32.mrb[33].mxu0 }
 0x352   :  { %vm1048_vm11 = vcmp.ge.f32.partialorder %v969_v13, 0.0  ;;  %v1064_v14 = vmul.f32 0.2, %v969_v13 }
 0x353   :  { %v1081_v15 = vsel %vm1049_vm0, %v2135_v11, %v1065_v12 }
 0x354   :  { %v2953_v16 = vsel %vm1096_vm12, %v1081_v15, -1e+30  ;;  %v1080_v19 = vsel %vm1048_vm11, %v969_v13, %v1064_v14  ;;  %v2138_v20 = vpop.f32.mrb[34].mxu0 }
 0x355   :  { %1181 = vst [vmem:[#allocation7 + $0x8] sm:$0xff] %v2953_v16  ;;  %v2958_v22 = vsel %vm1096_vm12, %v1080_v19, -1e+30  ;;  %vm1051_vm15 = vcmp.ge.f32.partialorder %v2138_v20, 0.0  ;;  %v1067_v23 = vmul.f32 0.2, %v2138_v20 }
 0x356   :  { %v979_v24 = vpop.f32.mrb[35].mxu0  ;;  %1180 = vst [vmem:[#allocation7] sm:$0xff] %v2958_v22 }
 0x357   :  { %vm1050_vm14 = vcmp.ge.f32.partialorder %v979_v24, 0.0  ;;  %v1066_v25 = vmul.f32 0.2, %v979_v24  ;;  %v1083_v26 = vsel %vm1051_vm15, %v2138_v20, %v1067_v23 }
 0x358   :  { %v2963_v27 = vsel %vm1096_vm12, %v1083_v26, -1e+30  ;;  %v2141_v29 = vpop.f32.mrb[36].mxu0 }
 0x359   :  { %v1082_v28 = vsel %vm1050_vm14, %v979_v24, %v1066_v25  ;;  %1183 = vst [vmem:[#allocation7 + $0x18] sm:$0xff] %v2963_v27  ;;  %v1216_v30 = vmax.f32 %v2963_v27, -1e+30  ;;  %vm1053_vm11 = vcmp.ge.f32.partialorder %v2141_v29, 0.0  ;;  %v989_v32 = vpop.f32.mrb[37].mxu0  ;;  %vm2322_vm14 = vmpackc.low %vm1096_vm12, %vm1096_vm12 }
 0x35a   :  { %v1166_v31 = vsel %vm1096_vm12, %v1082_v28, -1e+30  ;;  %v1069_v34 = vmul.f32 0.2, %v2141_v29  ;;  %vm1052_vm0 = vcmp.ge.f32.partialorder %v989_v32, 0.0  ;;  %v1238_v28 = vsub.s32 0, %v2865_v59 }
 0x35b   :  { %1182 = vst [vmem:[#allocation7 + $0x10] sm:$0xff] %v1166_v31  ;;  %v1215_v33 = vmax.f32 %v1166_v31, -1e+30  ;;  %v1220_v35 = vmax.f32 %v1216_v30, -1e+30 }
 0x35c   :  { %v1068_v36 = vmul.f32 0.2, %v989_v32  ;;  %v1085_v38 = vsel %vm1053_vm11, %v2141_v29, %v1069_v34  ;;  %v2144_v39 = vpop.f32.mrb[38].mxu0  ;;  %v1212_v25 = vld [vmem:[#allocation11] sm:$0x1] }
 0x35d   :  { %v1219_v37 = vmax.f32 %v1215_v33, -1e+30  ;;  %v1224_v40 = vmax.f32 %v1220_v35, -1e+30  ;;  %v1169_v41 = vsel %vm1096_vm12, %v1085_v38, -1e+30 }
 0x35e   :  { %v1084_v42 = vsel %vm1052_vm0, %v989_v32, %v1068_v36  ;;  %v999_v43 = vpop.f32.mrb[39].mxu0  ;;  %1185 = vst [vmem:[#allocation7 + $0x28] sm:$0xff] %v1169_v41  ;;  %v1214_v45 = vmax.f32 %v2953_v16, %v1169_v41 }
 0x35f   :  { %v1223_v44 = vmax.f32 %v1219_v37, -1e+30  ;;  %v1168_v46 = vsel %vm1096_vm12, %v1084_v42, -1e+30 }
 0x360   :  { %1184 = vst [vmem:[#allocation7 + $0x20] sm:$0xff] %v1168_v46  ;;  %v1213_v47 = vmax.f32 %v2958_v22, %v1168_v46  ;;  %v1218_v49 = vmax.f32 %v1214_v45, -1e+30  ;;  %v2147_v50 = vpop.f32.mrb[40].mxu0 }
 0x361   :  { %v1226_v48 = vmax.f32 %v1223_v44, %v1224_v40  ;;  %v1009_v52 = vpop.f32.mrb[41].mxu0 }
 0x362   :  { %v1217_v51 = vmax.f32 %v1213_v47, -1e+30  ;;  %v1222_v53 = vmax.f32 %v1218_v49, -1e+30 }
 0x364   :  { %v1221_v54 = vmax.f32 %v1217_v51, -1e+30  ;;  %v2150_v55 = vpop.f32.mrb[42].mxu0 }
 0x365   :  { %v1019_v57 = vpop.f32.mrb[43].mxu0 }
 0x366   :  { %v1225_v56 = vmax.f32 %v1221_v54, %v1222_v53 }
 0x368   :  { %v1227_v58 = vmax.f32 %v1225_v56, %v1226_v48  ;;  %v2153_v11 = vpop.f32.mrb[44].mxu0 }
 0x369   :  { %v1029_v13 = vpop.f32.mrb[45].mxu0 }
 0x36a   :  { %v1228_v12 = vrot.slane %v1227_v58, 4 }
 0x36c   :  { %v1229_v14 = vmax.f32 %v1227_v58, %v1228_v12  ;;  %v2156_v15 = vpop.f32.mrb[46].mxu0 }
 0x36d   :  { %v1039_v20 = vpop.f32.mrb[47].mxu0 }
 0x36e   :  { %v1230_v19 = vrot.slane %v1229_v14, 2 }
 0x370   :  { %v1231_v23 = vmax.f32 %v1229_v14, %v1230_v19 }
 0x372   :  { %v1232_v24 = vrot.slane %v1231_v23, 1 }
 0x374   :  { %v1233_v26 = vmax.f32 %v1231_v23, %v1232_v24 }
 0x376   :  { %v1234_v29 = vmax.f32 %v1212_v25, %v1233_v26 }
 0x378   :  { %v1239_v30 = vrot.slane %v1234_v29, %v1238_v28  ;;  %v1519_v32 = vsub.f32 %v1212_v25, %v1234_v29  ;;  %1576 = vst [vmem:[#allocation11] sm:$0x1] %v1234_v29 }
 0x37a   :  { %v1245_v33 = vsub.f32 %v1168_v46, %v1239_v30  ;;  %v1520_v34 = vmul.f32 1.442695, %v1519_v32  ;;  %v1241_v35 = vsub.f32 %v2958_v22, %v1239_v30  ;;  %v1242_v36 = vsub.f32 %v2953_v16, %v1239_v30 }
 0x37b   :  { %v1243_v37 = vsub.f32 %v1166_v31, %v1239_v30  ;;  %v1244_v38 = vsub.f32 %v2963_v27, %v1239_v30  ;;  %v1246_v39 = vsub.f32 %v1169_v41, %v1239_v30 }
 0x37c   :  { %v1265_v40 = vmul.f32 1.442695, %v1245_v33  ;;  %2353 = vpow2.f32 %v1520_v34  ;;  %v1257_v42 = vmul.f32 1.442695, %v1241_v35  ;;  %v1259_v43 = vmul.f32 1.442695, %v1242_v36 }
 0x37d   :  { %v1261_v44 = vmul.f32 1.442695, %v1243_v37  ;;  %v1263_v59 = vmul.f32 1.442695, %v1244_v38  ;;  %v1267_v45 = vmul.f32 1.442695, %v1246_v39 }
 0x37e   :  { %2355 = vpow2.f32 %v1265_v40 }
 0x37f   :  { %2357 = vpow2.f32 %v1257_v42 }
 0x380   :  { %2359 = vpow2.f32 %v1259_v43 }
 0x381   :  { %2361 = vpow2.f32 %v1261_v44 }
 0x382   :  { %2363 = vpow2.f32 %v1263_v59 }
 0x383   :  { %2365 = vpow2.f32 %v1267_v45 }
 0x386   :  { %v2354_v22 = vpop.eup %2353 }
 0x387   :  { %v2979_v46 = vrot.slane %v2354_v22, %v1238_v28 }
 0x388   :  { %v2356_v16 = vpop.eup %2355 }
 0x389   :  { %v2358_v31 = vpop.eup %2357 }
 0x38a   :  { %v2360_v27 = vpop.eup %2359 }
 0x38b   :  { %v2362_v41 = vpop.eup %2361  ;;  %v2321_v47 = vpack.c.bf16 %v2360_v27, %v2358_v31 }
 0x38c   :  { %v2364_v48 = vpop.eup %2363 }
 0x38d   :  { %v2366_v49 = vpop.eup %2365  ;;  %2323 = vmatprep.subr.msk.bf16.mxu1 %vm2322_vm14, %v2321_v47  ;;  %v2327_v50 = vpack.c.bf16 %v2364_v48, %v2362_v41 }
 0x38e   :  { %2326 = vmatpush3.bf16.msk.msra.mxu1 %vm2322_vm14, %v2321_v47  ;;  %v2333_v51 = vpack.c.bf16 %v2366_v49, %v2356_v16 }
 0x38f   :  { %2329 = vmatprep.subr.msk.bf16.mxu1 %vm2322_vm14, %v2327_v50 }
 0x392   :  { %2332 = vmatpush3.bf16.msk.msra.mxu1 %vm2322_vm14, %v2327_v50 }
 0x393   :  { %2335 = vmatprep.subr.msk.bf16.mxu1 %vm2322_vm14, %v2333_v51 }
 0x396   :  { %2338 = vmatpush3.bf16.msk.msra.mxu1 %vm2322_vm14, %v2333_v51 }
 0x399   :  { %2170 = vmatmul.mubr.msk.f32.vlgmr.msra.gmra.mrb[32].mxu1 %vm1311_vm1, %v2514_v21  ;;  %vm3120_vm1 = vcmp.eq.s32.totalorder %v2924_v6, %v2870_v60 }
 0x39a   :  { %2172 = vmatprep.mubr.msk.f32.mxu1 %vm1312_vm2, %v2514_v21  ;;  %vm3121_vm2 = vcmp.eq.s32.totalorder %v2931_v7, %v2870_v60 }
 0x39d   :  { %2173 = vmatmul.mubr.msk.f32.gmra.mrb[34].mxu1 %vm1313_vm3, %v2514_v21  ;;  %vm3122_vm3 = vcmp.eq.s32.totalorder %v2941_v9, %v2870_v60 }
 0x39e   :  { %2175 = vmatprep.mubr.msk.f32.mxu1 %vm1314_vm4, %v2514_v21  ;;  %vm3123_vm4 = vcmp.eq.s32.totalorder %v2944_v10, %v2870_v60 }
 0x3a1   :  { %2176 = vmatmul.mubr.msk.f32.gmra.mrb[36].mxu1 %vm1315_vm5, %v2514_v21 }
 0x3a2   :  { %2178 = vmatprep.mubr.msk.f32.mxu1 %vm1316_vm6, %v2514_v21 }
 0x3a5   :  { %2179 = vmatmul.mubr.msk.f32.gmra.mrb[38].mxu1 %vm1317_vm7, %v2514_v21 }
 0x3a6   :  { %2181 = vmatprep.mubr.msk.f32.mxu1 %vm1318_vm8, %v2514_v21 }
 0x3a9   :  { %2182 = vmatmul.mubr.msk.f32.gmra.mrb[40].mxu1 %vm1319_vm9, %v2514_v21 }
 0x3aa   :  { %2184 = vmatprep.mubr.msk.f32.mxu1 %vm1320_vm10, %v2514_v21 }
 0x3ad   :  { %2185 = vmatmul.mubr.msk.f32.gmra.mrb[42].mxu1 %vm3120_vm1, %v2514_v21 }
 0x3ae   :  { %2187 = vmatprep.mubr.msk.f32.mxu1 %vm3121_vm2, %v2514_v21 }
 0x3b1   :  { %2188 = vmatmul.mubr.msk.f32.gmra.mrb[44].mxu1 %vm1323_vm13, %v2514_v21 }
 0x3b2   :  { %2190 = vmatprep.mubr.msk.f32.mxu1 %vm3122_vm3, %v2514_v21 }
 0x3b5   :  { %2191 = vmatmul.mubr.msk.f32.gmra.mrb[46].mxu1 %vm3123_vm4, %v2514_v21 }
 0x3b6   :  { %2422 = shalt.err (!%p2419_p6)
}
 0x3b7   :  { %s2423_s6 = scalar_lea.hbm %s3117_s8, 2048 }
 0x3b8   :  { %p2424_p7 = scmp.ne.s32.totalorder %s3117_s8, %s2423_s6  ;;  %p2427_p8 = scmp.lt.u32.totalorder %s2423_s6, %s3117_s8 }
 0x3ba   :  { %p2429_p9 = pnand %p2427_p8, %p2424_p7 }
 0x3bc   :  { %2432 = shalt.err (!%p2429_p9)
}
 0x3bd   :  { %1600 = dma.vmem_to_hbm [thread:$0]  %s1595_s19, 2048, %s3117_s8, [#allocation9], %s2510_s23, %s2510_s23, %s2511_s24  }
 0x3be   :  { %s2433_s12 = scalar_lea.vmem %s3044_s21, 2048  ;;  %p2438_p11 = scmp.lt.s32.totalorder %s3044_s21, %s3044_s21 }
 0x3bf   :  { %p2434_p10 = scmp.ne.s32.totalorder %s3044_s21, %s2433_s12  ;;  %p2439_p12 = scmp.lt.s32.totalorder %s2433_s12, %s2433_s12 }
 0x3c1   :  { %p2440_p13 = por %p2439_p12, %p2438_p11 }
 0x3c3   :  { %p2441_p0 = pnand %p2440_p13, %p2434_p10 }
 0x3c5   :  { %2444 = shalt.err (!%p2441_p0)
}
 0x3c6   :  { %s2445_s15 = scalar_lea.hbm %s3116_s7, 2048 }
 0x3c7   :  { %p2446_p1 = scmp.ne.s32.totalorder %s3116_s7, %s2445_s15  ;;  %p2449_p2 = scmp.lt.u32.totalorder %s2445_s15, %s3116_s7 }
 0x3c9   :  { %p2451_p3 = pnand %p2449_p2, %p2446_p1 }
 0x3cb   :  { %2454 = shalt.err (!%p2451_p3)
}
 0x3cc   :  { %1588 = dma.vmem_to_hbm [thread:$0]  %s3044_s21, 2048, %s3116_s7, [#allocation4], %s2510_s23, %s2510_s23, %s2511_s24  }
 0x3cd   :  { %s2518_s4 = smov [#allocation11]  }
 0x3ce   :  { %s1619_s18 = sshll.u32 %s2518_s4, 4  ;;  %s1620_s18 = int_to_ptr.vmem [resolvable:$true] %s1619_s18 }
 0x3cf   :  { %s2455_s2 = scalar_lea.vmem %s1620_s18, 16  ;;  %s2459_s19 = scalar_lea.vmem %s1620_s18, 32 }
 0x3d0   :  { %p2456_p4 = scmp.ne.s32.totalorder %s1620_s18, %s2455_s2  ;;  %p2460_p5 = scmp.lt.s32.totalorder %s1620_s18, %s1620_s18 }
 0x3d1   :  { %p2461_p6 = scmp.lt.s32.totalorder %s2459_s19, %s2455_s2 }
 0x3d3   :  { %p2462_p7 = por %p2461_p6, %p2460_p5 }
 0x3d5   :  { %p2463_p8 = pnand %p2462_p7, %p2456_p4 }
 0x3d7   :  { %2466 = shalt.err (!%p2463_p8)
}
 0x3d8   :  { %s2467_s22 = scalar_lea.hbm %s3119_s10, 16 }
 0x3d9   :  { %p2468_p9 = scmp.ne.s32.totalorder %s3119_s10, %s2467_s22  ;;  %p2471_p10 = scmp.lt.u32.totalorder %s2467_s22, %s3119_s10 }
 0x3db   :  { %p2473_p11 = pnand %p2471_p10, %p2468_p9 }
 0x3dd   :  { %2476 = shalt.err (!%p2473_p11)
}
 0x3de   :  { %1622 = dma.vmem_to_hbm [thread:$0]  %s1620_s18, 16, %s3119_s10, [#allocation12]   ;;  %v1529_v18 = vmul.f32 0.0, %v2979_v46 }
 0x3df   :  { %s2519_s10 = smov [#allocation10]  }
 0x3e0   :  { %s1606_s28 = sshll.u32 %s2519_s10, 4  ;;  %s1607_s28 = int_to_ptr.vmem [resolvable:$true] %s1606_s28 }
 0x3e1   :  { %s2477_s29 = scalar_lea.vmem %s1607_s28, 2048  ;;  %p2482_p13 = scmp.lt.s32.totalorder %s1607_s28, %s1607_s28 }
 0x3e2   :  { %p2478_p12 = scmp.ne.s32.totalorder %s1607_s28, %s2477_s29  ;;  %p2483_p0 = scmp.lt.s32.totalorder %s2477_s29, %s2477_s29 }
 0x3e4   :  { %p2484_p1 = por %p2483_p0, %p2482_p13 }
 0x3e6   :  { %p2485_p2 = pnand %p2484_p1, %p2478_p12 }
 0x46c   :  { %v2171_v21 = vpop.f32.mrb[32].mxu1 }
 0x46d   :  { %v1545_v60 = vadd.f32 %v2171_v21, %v1529_v18  ;;  %v1424_v61 = vpop.f32.mrb[33].mxu1 }
 0x46e   :  { %v1544_v62 = vadd.f32 %v1529_v18, %v1424_v61 }
 0x46f   :  { %1561 = vst [vmem:[#allocation10 + $0x8] sm:$0xff] %v1545_v60 }
 0x470   :  { %1560 = vst [vmem:[#allocation10] sm:$0xff] %v1544_v62  ;;  %v2174_v17 = vpop.f32.mrb[34].mxu1 }
 0x471   :  { %v1547_v63 = vadd.f32 %v2174_v17, %v1529_v18  ;;  %v1434_v0 = vpop.f32.mrb[35].mxu1 }
 0x472   :  { %v1546_v1 = vadd.f32 %v1529_v18, %v1434_v0 }
 0x473   :  { %1563 = vst [vmem:[#allocation10 + $0x18] sm:$0xff] %v1547_v63 }
 0x474   :  { %1562 = vst [vmem:[#allocation10 + $0x10] sm:$0xff] %v1546_v1  ;;  %v2177_v2 = vpop.f32.mrb[36].mxu1 }
 0x475   :  { %v1549_v3 = vadd.f32 %v2177_v2, %v1529_v18  ;;  %v1444_v4 = vpop.f32.mrb[37].mxu1 }
 0x476   :  { %v1548_v5 = vadd.f32 %v1529_v18, %v1444_v4 }
 0x477   :  { %1565 = vst [vmem:[#allocation10 + $0x28] sm:$0xff] %v1549_v3 }
 0x478   :  { %1564 = vst [vmem:[#allocation10 + $0x20] sm:$0xff] %v1548_v5  ;;  %v2180_v6 = vpop.f32.mrb[38].mxu1 }
 0x479   :  { %v1551_v7 = vadd.f32 %v2180_v6, %v1529_v18  ;;  %v1454_v8 = vpop.f32.mrb[39].mxu1 }
 0x47a   :  { %v1550_v9 = vadd.f32 %v1529_v18, %v1454_v8 }
 0x47b   :  { %1567 = vst [vmem:[#allocation10 + $0x38] sm:$0xff] %v1551_v7 }
 0x47c   :  { %1566 = vst [vmem:[#allocation10 + $0x30] sm:$0xff] %v1550_v9  ;;  %v2183_v10 = vpop.f32.mrb[40].mxu1 }
 0x47d   :  { %v1553_v52 = vadd.f32 %v2183_v10, %v1529_v18  ;;  %v1464_v53 = vpop.f32.mrb[41].mxu1 }
 0x47e   :  { %v1552_v54 = vadd.f32 %v1529_v18, %v1464_v53 }
 0x47f   :  { %1569 = vst [vmem:[#allocation10 + $0x48] sm:$0xff] %v1553_v52 }
 0x480   :  { %1568 = vst [vmem:[#allocation10 + $0x40] sm:$0xff] %v1552_v54  ;;  %v2186_v55 = vpop.f32.mrb[42].mxu1 }
 0x481   :  { %v1555_v56 = vadd.f32 %v2186_v55, %v1529_v18  ;;  %v1474_v57 = vpop.f32.mrb[43].mxu1 }
 0x482   :  { %v1554_v58 = vadd.f32 %v1529_v18, %v1474_v57 }
 0x483   :  { %1571 = vst [vmem:[#allocation10 + $0x58] sm:$0xff] %v1555_v56 }
 0x484   :  { %1570 = vst [vmem:[#allocation10 + $0x50] sm:$0xff] %v1554_v58  ;;  %v2189_v11 = vpop.f32.mrb[44].mxu1 }
 0x485   :  { %v1557_v12 = vadd.f32 %v2189_v11, %v1529_v18  ;;  %v1484_v13 = vpop.f32.mrb[45].mxu1 }
 0x486   :  { %v1556_v14 = vadd.f32 %v1529_v18, %v1484_v13 }
 0x487   :  { %1573 = vst [vmem:[#allocation10 + $0x68] sm:$0xff] %v1557_v12 }
 0x488   :  { %1572 = vst [vmem:[#allocation10 + $0x60] sm:$0xff] %v1556_v14  ;;  %v2192_v15 = vpop.f32.mrb[46].mxu1 }
 0x489   :  { %v1559_v19 = vadd.f32 %v2192_v15, %v1529_v18  ;;  %v1494_v20 = vpop.f32.mrb[47].mxu1 }
 0x48a   :  { %v1558_v23 = vadd.f32 %v1529_v18, %v1494_v20 }
 0x48b   :  { %1575 = vst [vmem:[#allocation10 + $0x78] sm:$0xff] %v1559_v19 }
 0x48c   :  { %1574 = vst [vmem:[#allocation10 + $0x70] sm:$0xff] %v1558_v23 }
 0x48d   :  { %2488 = shalt.err (!%p2485_p2)
}
 0x48e   :  { %s2489_s12 = scalar_lea.hbm %s3118_s9, 2048 }
 0x48f   :  { %p2490_p3 = scmp.ne.s32.totalorder %s3118_s9, %s2489_s12  ;;  %p2493_p4 = scmp.lt.u32.totalorder %s2489_s12, %s3118_s9 }
 0x491   :  { %p2495_p5 = pnand %p2493_p4, %p2490_p3 }
 0x493   :  { %2498 = shalt.err (!%p2495_p5)
}
 0x494   :  { %1612 = dma.vmem_to_hbm [thread:$0]  %s1607_s28, 2048, %s3118_s9, [#allocation9], %s2510_s23, %s2510_s23, %s2511_s24  }
 0x495   :  { %2503 = dma.done.wait [#allocation4], 2048  }
 0x496   :  { %2504 = vsyncadd [#allocation4], 4294965248 }
 0x497   :  { %2505 = dma.done.wait [#allocation9], 4096  }
 0x498   :  { %2506 = vsyncadd [#allocation9], 4294963200 }
 0x499   :  { %2507 = dma.done.wait [#allocation12], 16  }
 0x49a   :  { %2508 = vsyncadd [#allocation12], 4294967280 }
 0x49b   :  { %1635 = vsyncpa [#allocation3], 1 }
 0x49c   :  { %1636 = vsyncpa [#allocation6], 1 }
 0x49d   :  { %1637 = vsyncpa [#allocation4], 1 }
 0x49e   :  { %1638 = vsyncpa [#allocation9], 1 }
 0x49f   :  { %1639 = vsyncpa [#allocation12], 1 }

</bundles_post_ra>
